<compile_context>
chip_gen: v6e
topology: v6e:2x2x1
jax: 0.10.0
libtpu: 0.0.40
codegen_flags: <defaults>
</compile_context>

<pallas_src>
import functools

import jax
import jax.numpy as jnp
from jax.experimental import pallas as pl
from jax.experimental.pallas import tpu as pltpu


def _seq_rnn_kernel(seq_len, future_n, rnn_num, *refs):
    """Whole forward pass for one batch tile in one grid step.

    refs (in order; bracketed ones present only when applicable):
      x_ref     : (TB, S)            f32   batch-major input tile
      h0_ref    : (rnn_num, TB, H)   bf16  initial hidden state
      wih0_ref  : (1, H)             f32   W_ih layer 0, transposed (torch (H, 1))
      whh0_ref  : (H, H)             bf16  W_hh layer 0, transposed
      [wih_u_ref: (rnn_num-1, H, H)  bf16  W_ih^l transposed, layers >= 1]
      [whh_u_ref: (rnn_num-1, H, H)  bf16  W_hh^l transposed, layers >= 1]
      [wdef_ref : ((S-1)*H, S-1)     bf16  block-diag(fc1.weight.T) for deferred fc]
      bias_ref  : (rnn_num, 1, H)    f32   b_ih^l + b_hh^l (pre-summed)
      wfc_ref   : (H, 1)             bf16  fc1 weight, transposed
      bfc_ref   : (1, 1)             f32   fc1 bias
      out_ref   : (TB, S + future_n) f32   written once at the end
    """
    refs = list(refs)
    x_ref, h0_ref, wih0_ref, whh0_ref = refs[:4]
    idx = 4
    if rnn_num > 1:
        wih_u_ref, whh_u_ref = refs[idx], refs[idx + 1]
        idx += 2
    if seq_len > 1:
        wdef_ref = refs[idx]
        idx += 1
    bias_ref, wfc_ref, bfc_ref, out_ref = refs[idx:idx + 4]

    f32, bf16 = jnp.float32, jnp.bfloat16

    # Parameters / state live in registers; MXU operands stay bf16, elementwise f32.
    h = [h0_ref[l] for l in range(rnn_num)]                 # (TB, H) bf16 each
    wih0 = wih0_ref[...]                                    # (1, H)  f32
    whh0 = whh0_ref[...]                                    # (H, H)  bf16
    if rnn_num > 1:
        wih_u = [wih_u_ref[l] for l in range(rnn_num - 1)]  # (H, H) bf16 each
        whh_u = [whh_u_ref[l] for l in range(rnn_num - 1)]
    else:
        wih_u, whh_u = [], []
    bias = [bias_ref[l] for l in range(rnn_num)]            # (1, H) f32 each
    wfc = wfc_ref[...]                                      # (H, 1) bf16
    bfc = bfc_ref[...]                                      # (1, 1) f32

    def rnn_stack(pre0):
        # pre0 = x_t * W_ih^0.T + (b_ih^0 + b_hh^0), f32 (TB, H), computed off-chain.
        h_bf = jnp.tanh(pre0 + jnp.dot(h[0], whh0,
                                       preferred_element_type=f32)).astype(bf16)
        h[0] = h_bf
        for l in range(1, rnn_num):
            # Split matmuls (no per-step lane concat): the h[l] @ W_hh^l term only
            # depends on the previous time step, so it can issue on the MXU while
            # the lower layer's tanh is still draining from the EUP.
            pre = (jnp.dot(h[l], whh_u[l - 1], preferred_element_type=f32)
                   + jnp.dot(h_bf, wih_u[l - 1], preferred_element_type=f32)
                   + bias[l])
            h_bf = jnp.tanh(pre).astype(bf16)
            h[l] = h_bf
        return h_bf                                         # top-layer hidden, bf16

    def fc(h_top):
        return jnp.dot(h_top, wfc, preferred_element_type=f32) + bfc   # (TB, 1) f32

    # Hoisted layer-0 input projection for the whole main sequence: one vectorized
    # pass (off the serial chain) instead of per-step broadcast work.
    x_tm = x_ref[...].T                                     # (S, TB) time-major, f32
    inp0_all = x_tm[:, :, None] * wih0 + bias[0]            # (S, TB, H) f32

    # NOTE: fully-unrolled time loops assume small static S / future_n.
    # TODO(synk): for S >~ 64 switch to a lax.fori_loop over time chunks with
    # inp0_all held in VMEM scratch to avoid vreg spills / program-size blowup.
    h_tops = []    # top-layer hiddens whose fc is deferred (t = 0 .. S-2)
    ys_tail = []   # fc outputs needed as autoregressive feedback (t = S-1, futures)
    for t in range(seq_len):
        h_top = rnn_stack(inp0_all[t])
        if t < seq_len - 1:
            h_tops.append(h_top)
        else:
            ys_tail.append(fc(h_top))

    # "Predict next n status": feedback value stays in registers (no store->load).
    for _ in range(future_n):
        pre0 = ys_tail[-1] * wih0 + bias[0]                 # (TB, H) f32
        ys_tail.append(fc(rnn_stack(pre0)))

    # Deferred fc head: ONE (TB,(S-1)*H) @ ((S-1)*H, S-1) matmul against the
    # block-diagonal fc weight replaces S-1 tiny matmuls + width-1 column concats,
    # and yields the output columns batch-major with no reshapes/transposes.
    parts = []
    if h_tops:
        h_cat = jnp.concatenate(h_tops, axis=1)             # (TB, (S-1)*H) bf16
        parts.append(jnp.dot(h_cat, wdef_ref[...],
                             preferred_element_type=f32) + bfc)   # (TB, S-1) f32
    parts.extend(ys_tail)                                   # (TB, 1) each
    # Single contiguous store of the whole output tile.
    out_ref[...] = jnp.concatenate(parts, axis=1)           # (TB, S + future_n)


def sequence_forward(x, h0, params, future_n=0):
    """Pallas wrapper.  x: (B, S) f32, h0: (rnn_num, B, H) f32 -> (B, S+future_n) f32."""
    wih0_t, wih_u_t, whh_t, bih, bhh, wfc_t, bfc = params
    B, S = x.shape
    rnn_num, H, _ = whh_t.shape
    assert wfc_t.shape == (H, 1)   # squeeze().permute(1, 0) assumes output_size == 1
    assert S >= 1

    f32, bf16 = jnp.float32, jnp.bfloat16

    # Fold / pre-cast parameters once, outside the serial kernel.  Only MXU operands
    # go bf16; biases and the layer-0 elementwise projection stay f32.
    bias = (bih + bhh).astype(f32)                                    # (rnn_num, 1, H)

    # Batch tile: split only when each TensorCore gets full sublane tiles (v7x has
    # 2 TCs).  At B = 8 do NOT split (grid of one).
    TB = 8 if (B >= 16 and B % 8 == 0) else B
    grid = (B // TB,)

    args = [x.astype(f32), h0.astype(bf16), wih0_t.astype(f32), whh_t[0].astype(bf16)]
    in_specs = [
        pl.BlockSpec((TB, S), lambda b: (b, 0)),                      # x (batch-major)
        pl.BlockSpec((rnn_num, TB, H), lambda b: (0, b, 0)),          # h0
        pl.BlockSpec((1, H), lambda b: (0, 0)),                       # W_ih^0.T
        pl.BlockSpec((H, H), lambda b: (0, 0)),                       # W_hh^0.T
    ]
    if rnn_num > 1:
        args += [wih_u_t.astype(bf16), whh_t[1:].astype(bf16)]
        in_specs += [pl.BlockSpec((rnn_num - 1, H, H), lambda b: (0, 0, 0)),
                     pl.BlockSpec((rnn_num - 1, H, H), lambda b: (0, 0, 0))]
    if S > 1:
        # block-diag(fc1.weight.T): deferred fc head becomes ONE in-kernel matmul.
        wdef = jnp.kron(jnp.eye(S - 1, dtype=f32), wfc_t).astype(bf16)  # ((S-1)*H, S-1)
        args.append(wdef)
        in_specs.append(pl.BlockSpec(((S - 1) * H, S - 1), lambda b: (0, 0)))
    args += [bias, wfc_t.astype(bf16), bfc.astype(f32)]
    in_specs += [
        pl.BlockSpec((rnn_num, 1, H), lambda b: (0, 0, 0)),           # b_ih + b_hh
        pl.BlockSpec((H, 1), lambda b: (0, 0)),                       # fc1.weight.T
        pl.BlockSpec((1, 1), lambda b: (0, 0)),                       # fc1.bias
    ]

    kernel = functools.partial(_seq_rnn_kernel, S, future_n, rnn_num)
    return pl.pallas_call(
        kernel,
        out_shape=jax.ShapeDtypeStruct((B, S + future_n), f32),
        grid=grid,
        in_specs=in_specs,
        out_specs=pl.BlockSpec((TB, S + future_n), lambda b: (b, 0)),
        compiler_params=pltpu.CompilerParams(
            dimension_semantics=("parallel",)),    # batch tiles across TensorCores
    )(*args)


def sequence_forward_ref(x, h0, params, future_n=0, mxu_dtype=jnp.bfloat16):
    """Pure-JAX reference mirroring nn.RNN + fc1 semantics.

    mxu_dtype=bf16 mirrors the kernel's numerics exactly (bf16 matmul operands,
    f32 accumulation, f32 elementwise/tanh); mxu_dtype=f32 is the exact-f32 model.
    """
    wih0_t, wih_u_t, whh_t, bih, bhh, wfc_t, bfc = params
    B, S = x.shape
    rnn_num = whh_t.shape[0]
    bias = bih + bhh
    whh_m = whh_t.astype(mxu_dtype)
    wih_u_m = wih_u_t.astype(mxu_dtype)
    wfc_m = wfc_t.astype(mxu_dtype)
    h = [h0[l].astype(mxu_dtype) for l in range(rnn_num)]

    def stack(x_col):                                        # x_col: (B, 1) f32
        pre0 = x_col * wih0_t + bias[0]
        hb = jnp.tanh(pre0 + jnp.dot(h[0], whh_m[0],
                                     preferred_element_type=jnp.float32)
                      ).astype(mxu_dtype)
        h[0] = hb
        for l in range(1, rnn_num):
            pre = (jnp.dot(h[l], whh_m[l], preferred_element_type=jnp.float32)
                   + jnp.dot(hb, wih_u_m[l - 1], preferred_element_type=jnp.float32)
                   + bias[l])
            hb = jnp.tanh(pre).astype(mxu_dtype)
            h[l] = hb
        return hb

    def fc(h_top):
        return jnp.dot(h_top, wfc_m, preferred_element_type=jnp.float32) + bfc

    outs = []
    for t in range(S):
        outs.append(fc(stack(x[:, t:t + 1])))
    for _ in range(future_n):
        outs.append(fc(stack(outs[-1])))
    return jnp.concatenate(outs, axis=1)                     # (B, S + future_n)


if __name__ == "__main__":
    # small shapes consistent with the module
    B, S = 8, 8              # batch, sequence length
    H = 32                   # hidden_size
    RNN_NUM = 2              # rnn_num (stacked RNN layers)
    O = 1                    # output_size (== input_feature_size, needed for future loop)
    FUTURE_N = 2             # predict 2 future steps

    key = jax.random.PRNGKey(0)
    ks = jax.random.split(key, 8)
    bound = 1.0 / (H ** 0.5)  # PyTorch default init range for RNN / Linear

    params = (
        jax.random.uniform(ks[0], (1, H), jnp.float32, -bound, bound),               # W_ih^0.T
        jax.random.uniform(ks[1], (RNN_NUM - 1, H, H), jnp.float32, -bound, bound),  # W_ih^l.T, l>=1
        jax.random.uniform(ks[2], (RNN_NUM, H, H), jnp.float32, -bound, bound),      # W_hh^l.T
        jax.random.uniform(ks[3], (RNN_NUM, 1, H), jnp.float32, -bound, bound),      # b_ih^l
        jax.random.uniform(ks[4], (RNN_NUM, 1, H), jnp.float32, -bound, bound),      # b_hh^l
        jax.random.uniform(ks[5], (H, O), jnp.float32, -bound, bound),               # fc1.weight.T
        jax.random.uniform(ks[6], (1, O), jnp.float32, -bound, bound),               # fc1.bias
    )

    # deterministic sine-wave-style input, like the original script's data = sin(x / T)
    phase = jax.random.uniform(ks[7], (B, 1), jnp.float32, 0.0, 100.0)
    x = jnp.sin((phase + jnp.arange(S, dtype=jnp.float32)[None, :]) / 20.0)
    h0 = jnp.zeros((RNN_NUM, B, H), jnp.float32)   # init_hidden

    out = jax.block_until_ready(sequence_forward(x, h0, params, future_n=FUTURE_N))
    assert out.shape == (B, S + FUTURE_N)

    ref_bf16 = sequence_forward_ref(x, h0, params, FUTURE_N, mxu_dtype=jnp.bfloat16)
    ref_f32 = sequence_forward_ref(x, h0, params, FUTURE_N, mxu_dtype=jnp.float32)
    assert jnp.allclose(out, ref_bf16, atol=1e-3, rtol=1e-3), "mismatch vs bf16-MXU reference"
    assert jnp.allclose(out, ref_f32, atol=1e-1), "drift vs exact-f32 reference too large"

    # Also exercise the batch-grid ("parallel" across TensorCores) path at B >= 16.
    B2 = 16
    phase2 = jax.random.uniform(jax.random.PRNGKey(1), (B2, 1), jnp.float32, 0.0, 100.0)
    x2 = jnp.sin((phase2 + jnp.arange(S, dtype=jnp.float32)[None, :]) / 20.0)
    h0_2 = jnp.zeros((RNN_NUM, B2, H), jnp.float32)
    out2 = jax.block_until_ready(sequence_forward(x2, h0_2, params, future_n=FUTURE_N))
    ref2 = sequence_forward_ref(x2, h0_2, params, FUTURE_N, mxu_dtype=jnp.bfloat16)
    assert out2.shape == (B2, S + FUTURE_N)
    assert jnp.allclose(out2, ref2, atol=1e-3, rtol=1e-3), "mismatch on batch-grid path"

    print("KERNEL_OK")
</pallas_src>

<mosaic_0001>
module attributes {stable_mosaic.version = 11 : i64} {
  func.func @_seq_rnn_kernel(%arg0: i32, %arg1: memref<8x8xf32, #tpu.memory_space<vmem>>, %arg2: memref<2x8x32xbf16, #tpu.memory_space<vmem>>, %arg3: memref<1x32xf32, #tpu.memory_space<vmem>>, %arg4: memref<32x32xbf16, #tpu.memory_space<vmem>>, %arg5: memref<1x32x32xbf16, #tpu.memory_space<vmem>>, %arg6: memref<1x32x32xbf16, #tpu.memory_space<vmem>>, %arg7: memref<224x7xbf16, #tpu.memory_space<vmem>>, %arg8: memref<2x1x32xf32, #tpu.memory_space<vmem>>, %arg9: memref<32x1xbf16, #tpu.memory_space<vmem>>, %arg10: memref<1x1xf32, #tpu.memory_space<vmem>>, %arg11: memref<8x10xf32, #tpu.memory_space<vmem>>) attributes {dimension_semantics = [#tpu.dimension_semantics<parallel>], iteration_bounds = array<i64: 1>, scalar_prefetch = 0 : i64, scratch_operands = 0 : i64, tpu.core_type = #tpu.core_type<tc>, window_params = [{transform_indices = @transform_0, window_bounds = array<i64: 8, 8>}, {transform_indices = @transform_1, window_bounds = array<i64: 2, 8, 32>}, {pipeline_mode = #tpu.pipeline_mode<synchronous>, transform_indices = @transform_2, window_bounds = array<i64: 1, 32>}, {pipeline_mode = #tpu.pipeline_mode<synchronous>, transform_indices = @transform_3, window_bounds = array<i64: 32, 32>}, {pipeline_mode = #tpu.pipeline_mode<synchronous>, transform_indices = @transform_4, window_bounds = array<i64: 1, 32, 32>}, {pipeline_mode = #tpu.pipeline_mode<synchronous>, transform_indices = @transform_5, window_bounds = array<i64: 1, 32, 32>}, {pipeline_mode = #tpu.pipeline_mode<synchronous>, transform_indices = @transform_6, window_bounds = array<i64: 224, 7>}, {pipeline_mode = #tpu.pipeline_mode<synchronous>, transform_indices = @transform_7, window_bounds = array<i64: 2, 1, 32>}, {pipeline_mode = #tpu.pipeline_mode<synchronous>, transform_indices = @transform_8, window_bounds = array<i64: 32, 1>}, {pipeline_mode = #tpu.pipeline_mode<synchronous>, transform_indices = @transform_9, window_bounds = array<i64: 1, 1>}, {transform_indices = @transform_10, window_bounds = array<i64: 8, 10>}]} {
    %c0 = arith.constant 0 : index
    %c0_0 = arith.constant 0 : index
    %c0_1 = arith.constant 0 : index
    %0 = vector.load %arg2[%c0, %c0_0, %c0_1] : memref<2x8x32xbf16, #tpu.memory_space<vmem>>, vector<1x8x32xbf16>
    %1 = vector.shape_cast %0 : vector<1x8x32xbf16> to vector<8x32xbf16>
    %c1 = arith.constant 1 : index
    %c0_2 = arith.constant 0 : index
    %c0_3 = arith.constant 0 : index
    %2 = vector.load %arg2[%c1, %c0_2, %c0_3] : memref<2x8x32xbf16, #tpu.memory_space<vmem>>, vector<1x8x32xbf16>
    %3 = vector.shape_cast %2 : vector<1x8x32xbf16> to vector<8x32xbf16>
    %c0_4 = arith.constant 0 : index
    %c0_5 = arith.constant 0 : index
    %4 = vector.load %arg3[%c0_4, %c0_5] : memref<1x32xf32, #tpu.memory_space<vmem>>, vector<1x32xf32>
    %c0_6 = arith.constant 0 : index
    %c0_7 = arith.constant 0 : index
    %5 = vector.load %arg4[%c0_6, %c0_7] : memref<32x32xbf16, #tpu.memory_space<vmem>>, vector<32x32xbf16>
    %c0_8 = arith.constant 0 : index
    %c0_9 = arith.constant 0 : index
    %c0_10 = arith.constant 0 : index
    %6 = vector.load %arg5[%c0_8, %c0_9, %c0_10] : memref<1x32x32xbf16, #tpu.memory_space<vmem>>, vector<1x32x32xbf16>
    %7 = vector.shape_cast %6 : vector<1x32x32xbf16> to vector<32x32xbf16>
    %c0_11 = arith.constant 0 : index
    %c0_12 = arith.constant 0 : index
    %c0_13 = arith.constant 0 : index
    %8 = vector.load %arg6[%c0_11, %c0_12, %c0_13] : memref<1x32x32xbf16, #tpu.memory_space<vmem>>, vector<1x32x32xbf16>
    %9 = vector.shape_cast %8 : vector<1x32x32xbf16> to vector<32x32xbf16>
    %c0_14 = arith.constant 0 : index
    %c0_15 = arith.constant 0 : index
    %c0_16 = arith.constant 0 : index
    %10 = vector.load %arg8[%c0_14, %c0_15, %c0_16] : memref<2x1x32xf32, #tpu.memory_space<vmem>>, vector<1x1x32xf32>
    %11 = vector.shape_cast %10 : vector<1x1x32xf32> to vector<1x32xf32>
    %c1_17 = arith.constant 1 : index
    %c0_18 = arith.constant 0 : index
    %c0_19 = arith.constant 0 : index
    %12 = vector.load %arg8[%c1_17, %c0_18, %c0_19] : memref<2x1x32xf32, #tpu.memory_space<vmem>>, vector<1x1x32xf32>
    %13 = vector.shape_cast %12 : vector<1x1x32xf32> to vector<1x32xf32>
    %c0_20 = arith.constant 0 : index
    %c0_21 = arith.constant 0 : index
    %14 = vector.load %arg9[%c0_20, %c0_21] : memref<32x1xbf16, #tpu.memory_space<vmem>>, vector<32x1xbf16>
    %c0_22 = arith.constant 0 : index
    %c0_23 = arith.constant 0 : index
    %15 = vector.load %arg10[%c0_22, %c0_23] : memref<1x1xf32, #tpu.memory_space<vmem>>, vector<1x1xf32>
    %c0_24 = arith.constant 0 : index
    %c0_25 = arith.constant 0 : index
    %16 = vector.load %arg1[%c0_24, %c0_25] : memref<8x8xf32, #tpu.memory_space<vmem>>, vector<8x8xf32>
    %17 = tpu.transpose %16, [1, 0] : vector<8x8xf32> -> vector<8x8xf32>
    %18 = vector.shape_cast %17 : vector<8x8xf32> to vector<8x8x1xf32>
    %19 = vector.shape_cast %4 : vector<1x32xf32> to vector<1x1x32xf32>
    %20 = vector.broadcast %18 : vector<8x8x1xf32> to vector<8x8x32xf32>
    %21 = vector.broadcast %19 : vector<1x1x32xf32> to vector<8x8x32xf32>
    %22 = arith.mulf %20, %21 : vector<8x8x32xf32>
    %23 = vector.shape_cast %11 : vector<1x32xf32> to vector<1x1x32xf32>
    %24 = vector.broadcast %23 : vector<1x1x32xf32> to vector<8x8x32xf32>
    %25 = arith.addf %22, %24 : vector<8x8x32xf32>
    %26 = vector.extract_strided_slice %25 {offsets = [0, 0, 0], sizes = [1, 8, 32], strides = [1, 1, 1]} : vector<8x8x32xf32> to vector<1x8x32xf32>
    %27 = vector.shape_cast %26 : vector<1x8x32xf32> to vector<8x32xf32>
    %cst = arith.constant dense<0.000000e+00> : vector<8x32xf32>
    %28 = tpu.matmul %1, %5, %cst {dimension_numbers = #tpu.dot_dimension_numbers<[1], [0], [0], [1], [0, 0, 1, 1], [], []>} : vector<8x32xbf16>, vector<32x32xbf16>, vector<8x32xf32> -> vector<8x32xf32>
    %29 = arith.addf %27, %28 : vector<8x32xf32>
    %30 = math.tanh %29 : vector<8x32xf32>
    %31 = arith.truncf %30 : vector<8x32xf32> to vector<8x32xbf16>
    %cst_26 = arith.constant dense<0.000000e+00> : vector<8x32xf32>
    %32 = tpu.matmul %3, %9, %cst_26 {dimension_numbers = #tpu.dot_dimension_numbers<[1], [0], [0], [1], [0, 0, 1, 1], [], []>} : vector<8x32xbf16>, vector<32x32xbf16>, vector<8x32xf32> -> vector<8x32xf32>
    %cst_27 = arith.constant dense<0.000000e+00> : vector<8x32xf32>
    %33 = tpu.matmul %31, %7, %cst_27 {dimension_numbers = #tpu.dot_dimension_numbers<[1], [0], [0], [1], [0, 0, 1, 1], [], []>} : vector<8x32xbf16>, vector<32x32xbf16>, vector<8x32xf32> -> vector<8x32xf32>
    %34 = arith.addf %32, %33 : vector<8x32xf32>
    %35 = vector.broadcast %13 : vector<1x32xf32> to vector<8x32xf32>
    %36 = arith.addf %34, %35 : vector<8x32xf32>
    %37 = math.tanh %36 : vector<8x32xf32>
    %38 = arith.truncf %37 : vector<8x32xf32> to vector<8x32xbf16>
    %39 = vector.extract_strided_slice %25 {offsets = [1, 0, 0], sizes = [1, 8, 32], strides = [1, 1, 1]} : vector<8x8x32xf32> to vector<1x8x32xf32>
    %40 = vector.shape_cast %39 : vector<1x8x32xf32> to vector<8x32xf32>
    %cst_28 = arith.constant dense<0.000000e+00> : vector<8x32xf32>
    %41 = tpu.matmul %31, %5, %cst_28 {dimension_numbers = #tpu.dot_dimension_numbers<[1], [0], [0], [1], [0, 0, 1, 1], [], []>} : vector<8x32xbf16>, vector<32x32xbf16>, vector<8x32xf32> -> vector<8x32xf32>
    %42 = arith.addf %40, %41 : vector<8x32xf32>
    %43 = math.tanh %42 : vector<8x32xf32>
    %44 = arith.truncf %43 : vector<8x32xf32> to vector<8x32xbf16>
    %cst_29 = arith.constant dense<0.000000e+00> : vector<8x32xf32>
    %45 = tpu.matmul %38, %9, %cst_29 {dimension_numbers = #tpu.dot_dimension_numbers<[1], [0], [0], [1], [0, 0, 1, 1], [], []>} : vector<8x32xbf16>, vector<32x32xbf16>, vector<8x32xf32> -> vector<8x32xf32>
    %cst_30 = arith.constant dense<0.000000e+00> : vector<8x32xf32>
    %46 = tpu.matmul %44, %7, %cst_30 {dimension_numbers = #tpu.dot_dimension_numbers<[1], [0], [0], [1], [0, 0, 1, 1], [], []>} : vector<8x32xbf16>, vector<32x32xbf16>, vector<8x32xf32> -> vector<8x32xf32>
    %47 = arith.addf %45, %46 : vector<8x32xf32>
    %48 = vector.broadcast %13 : vector<1x32xf32> to vector<8x32xf32>
    %49 = arith.addf %47, %48 : vector<8x32xf32>
    %50 = math.tanh %49 : vector<8x32xf32>
    %51 = arith.truncf %50 : vector<8x32xf32> to vector<8x32xbf16>
    %52 = vector.extract_strided_slice %25 {offsets = [2, 0, 0], sizes = [1, 8, 32], strides = [1, 1, 1]} : vector<8x8x32xf32> to vector<1x8x32xf32>
    %53 = vector.shape_cast %52 : vector<1x8x32xf32> to vector<8x32xf32>
    %cst_31 = arith.constant dense<0.000000e+00> : vector<8x32xf32>
    %54 = tpu.matmul %44, %5, %cst_31 {dimension_numbers = #tpu.dot_dimension_numbers<[1], [0], [0], [1], [0, 0, 1, 1], [], []>} : vector<8x32xbf16>, vector<32x32xbf16>, vector<8x32xf32> -> vector<8x32xf32>
    %55 = arith.addf %53, %54 : vector<8x32xf32>
    %56 = math.tanh %55 : vector<8x32xf32>
    %57 = arith.truncf %56 : vector<8x32xf32> to vector<8x32xbf16>
    %cst_32 = arith.constant dense<0.000000e+00> : vector<8x32xf32>
    %58 = tpu.matmul %51, %9, %cst_32 {dimension_numbers = #tpu.dot_dimension_numbers<[1], [0], [0], [1], [0, 0, 1, 1], [], []>} : vector<8x32xbf16>, vector<32x32xbf16>, vector<8x32xf32> -> vector<8x32xf32>
    %cst_33 = arith.constant dense<0.000000e+00> : vector<8x32xf32>
    %59 = tpu.matmul %57, %7, %cst_33 {dimension_numbers = #tpu.dot_dimension_numbers<[1], [0], [0], [1], [0, 0, 1, 1], [], []>} : vector<8x32xbf16>, vector<32x32xbf16>, vector<8x32xf32> -> vector<8x32xf32>
    %60 = arith.addf %58, %59 : vector<8x32xf32>
    %61 = vector.broadcast %13 : vector<1x32xf32> to vector<8x32xf32>
    %62 = arith.addf %60, %61 : vector<8x32xf32>
    %63 = math.tanh %62 : vector<8x32xf32>
    %64 = arith.truncf %63 : vector<8x32xf32> to vector<8x32xbf16>
    %65 = vector.extract_strided_slice %25 {offsets = [3, 0, 0], sizes = [1, 8, 32], strides = [1, 1, 1]} : vector<8x8x32xf32> to vector<1x8x32xf32>
    %66 = vector.shape_cast %65 : vector<1x8x32xf32> to vector<8x32xf32>
    %cst_34 = arith.constant dense<0.000000e+00> : vector<8x32xf32>
    %67 = tpu.matmul %57, %5, %cst_34 {dimension_numbers = #tpu.dot_dimension_numbers<[1], [0], [0], [1], [0, 0, 1, 1], [], []>} : vector<8x32xbf16>, vector<32x32xbf16>, vector<8x32xf32> -> vector<8x32xf32>
    %68 = arith.addf %66, %67 : vector<8x32xf32>
    %69 = math.tanh %68 : vector<8x32xf32>
    %70 = arith.truncf %69 : vector<8x32xf32> to vector<8x32xbf16>
    %cst_35 = arith.constant dense<0.000000e+00> : vector<8x32xf32>
    %71 = tpu.matmul %64, %9, %cst_35 {dimension_numbers = #tpu.dot_dimension_numbers<[1], [0], [0], [1], [0, 0, 1, 1], [], []>} : vector<8x32xbf16>, vector<32x32xbf16>, vector<8x32xf32> -> vector<8x32xf32>
    %cst_36 = arith.constant dense<0.000000e+00> : vector<8x32xf32>
    %72 = tpu.matmul %70, %7, %cst_36 {dimension_numbers = #tpu.dot_dimension_numbers<[1], [0], [0], [1], [0, 0, 1, 1], [], []>} : vector<8x32xbf16>, vector<32x32xbf16>, vector<8x32xf32> -> vector<8x32xf32>
    %73 = arith.addf %71, %72 : vector<8x32xf32>
    %74 = vector.broadcast %13 : vector<1x32xf32> to vector<8x32xf32>
    %75 = arith.addf %73, %74 : vector<8x32xf32>
    %76 = math.tanh %75 : vector<8x32xf32>
    %77 = arith.truncf %76 : vector<8x32xf32> to vector<8x32xbf16>
    %78 = vector.extract_strided_slice %25 {offsets = [4, 0, 0], sizes = [1, 8, 32], strides = [1, 1, 1]} : vector<8x8x32xf32> to vector<1x8x32xf32>
    %79 = vector.shape_cast %78 : vector<1x8x32xf32> to vector<8x32xf32>
    %cst_37 = arith.constant dense<0.000000e+00> : vector<8x32xf32>
    %80 = tpu.matmul %70, %5, %cst_37 {dimension_numbers = #tpu.dot_dimension_numbers<[1], [0], [0], [1], [0, 0, 1, 1], [], []>} : vector<8x32xbf16>, vector<32x32xbf16>, vector<8x32xf32> -> vector<8x32xf32>
    %81 = arith.addf %79, %80 : vector<8x32xf32>
    %82 = math.tanh %81 : vector<8x32xf32>
    %83 = arith.truncf %82 : vector<8x32xf32> to vector<8x32xbf16>
    %cst_38 = arith.constant dense<0.000000e+00> : vector<8x32xf32>
    %84 = tpu.matmul %77, %9, %cst_38 {dimension_numbers = #tpu.dot_dimension_numbers<[1], [0], [0], [1], [0, 0, 1, 1], [], []>} : vector<8x32xbf16>, vector<32x32xbf16>, vector<8x32xf32> -> vector<8x32xf32>
    %cst_39 = arith.constant dense<0.000000e+00> : vector<8x32xf32>
    %85 = tpu.matmul %83, %7, %cst_39 {dimension_numbers = #tpu.dot_dimension_numbers<[1], [0], [0], [1], [0, 0, 1, 1], [], []>} : vector<8x32xbf16>, vector<32x32xbf16>, vector<8x32xf32> -> vector<8x32xf32>
    %86 = arith.addf %84, %85 : vector<8x32xf32>
    %87 = vector.broadcast %13 : vector<1x32xf32> to vector<8x32xf32>
    %88 = arith.addf %86, %87 : vector<8x32xf32>
    %89 = math.tanh %88 : vector<8x32xf32>
    %90 = arith.truncf %89 : vector<8x32xf32> to vector<8x32xbf16>
    %91 = vector.extract_strided_slice %25 {offsets = [5, 0, 0], sizes = [1, 8, 32], strides = [1, 1, 1]} : vector<8x8x32xf32> to vector<1x8x32xf32>
    %92 = vector.shape_cast %91 : vector<1x8x32xf32> to vector<8x32xf32>
    %cst_40 = arith.constant dense<0.000000e+00> : vector<8x32xf32>
    %93 = tpu.matmul %83, %5, %cst_40 {dimension_numbers = #tpu.dot_dimension_numbers<[1], [0], [0], [1], [0, 0, 1, 1], [], []>} : vector<8x32xbf16>, vector<32x32xbf16>, vector<8x32xf32> -> vector<8x32xf32>
    %94 = arith.addf %92, %93 : vector<8x32xf32>
    %95 = math.tanh %94 : vector<8x32xf32>
    %96 = arith.truncf %95 : vector<8x32xf32> to vector<8x32xbf16>
    %cst_41 = arith.constant dense<0.000000e+00> : vector<8x32xf32>
    %97 = tpu.matmul %90, %9, %cst_41 {dimension_numbers = #tpu.dot_dimension_numbers<[1], [0], [0], [1], [0, 0, 1, 1], [], []>} : vector<8x32xbf16>, vector<32x32xbf16>, vector<8x32xf32> -> vector<8x32xf32>
    %cst_42 = arith.constant dense<0.000000e+00> : vector<8x32xf32>
    %98 = tpu.matmul %96, %7, %cst_42 {dimension_numbers = #tpu.dot_dimension_numbers<[1], [0], [0], [1], [0, 0, 1, 1], [], []>} : vector<8x32xbf16>, vector<32x32xbf16>, vector<8x32xf32> -> vector<8x32xf32>
    %99 = arith.addf %97, %98 : vector<8x32xf32>
    %100 = vector.broadcast %13 : vector<1x32xf32> to vector<8x32xf32>
    %101 = arith.addf %99, %100 : vector<8x32xf32>
    %102 = math.tanh %101 : vector<8x32xf32>
    %103 = arith.truncf %102 : vector<8x32xf32> to vector<8x32xbf16>
    %104 = vector.extract_strided_slice %25 {offsets = [6, 0, 0], sizes = [1, 8, 32], strides = [1, 1, 1]} : vector<8x8x32xf32> to vector<1x8x32xf32>
    %105 = vector.shape_cast %104 : vector<1x8x32xf32> to vector<8x32xf32>
    %cst_43 = arith.constant dense<0.000000e+00> : vector<8x32xf32>
    %106 = tpu.matmul %96, %5, %cst_43 {dimension_numbers = #tpu.dot_dimension_numbers<[1], [0], [0], [1], [0, 0, 1, 1], [], []>} : vector<8x32xbf16>, vector<32x32xbf16>, vector<8x32xf32> -> vector<8x32xf32>
    %107 = arith.addf %105, %106 : vector<8x32xf32>
    %108 = math.tanh %107 : vector<8x32xf32>
    %109 = arith.truncf %108 : vector<8x32xf32> to vector<8x32xbf16>
    %cst_44 = arith.constant dense<0.000000e+00> : vector<8x32xf32>
    %110 = tpu.matmul %103, %9, %cst_44 {dimension_numbers = #tpu.dot_dimension_numbers<[1], [0], [0], [1], [0, 0, 1, 1], [], []>} : vector<8x32xbf16>, vector<32x32xbf16>, vector<8x32xf32> -> vector<8x32xf32>
    %cst_45 = arith.constant dense<0.000000e+00> : vector<8x32xf32>
    %111 = tpu.matmul %109, %7, %cst_45 {dimension_numbers = #tpu.dot_dimension_numbers<[1], [0], [0], [1], [0, 0, 1, 1], [], []>} : vector<8x32xbf16>, vector<32x32xbf16>, vector<8x32xf32> -> vector<8x32xf32>
    %112 = arith.addf %110, %111 : vector<8x32xf32>
    %113 = vector.broadcast %13 : vector<1x32xf32> to vector<8x32xf32>
    %114 = arith.addf %112, %113 : vector<8x32xf32>
    %115 = math.tanh %114 : vector<8x32xf32>
    %116 = arith.truncf %115 : vector<8x32xf32> to vector<8x32xbf16>
    %117 = vector.extract_strided_slice %25 {offsets = [7, 0, 0], sizes = [1, 8, 32], strides = [1, 1, 1]} : vector<8x8x32xf32> to vector<1x8x32xf32>
    %118 = vector.shape_cast %117 : vector<1x8x32xf32> to vector<8x32xf32>
    %cst_46 = arith.constant dense<0.000000e+00> : vector<8x32xf32>
    %119 = tpu.matmul %109, %5, %cst_46 {dimension_numbers = #tpu.dot_dimension_numbers<[1], [0], [0], [1], [0, 0, 1, 1], [], []>} : vector<8x32xbf16>, vector<32x32xbf16>, vector<8x32xf32> -> vector<8x32xf32>
    %120 = arith.addf %118, %119 : vector<8x32xf32>
    %121 = math.tanh %120 : vector<8x32xf32>
    %122 = arith.truncf %121 : vector<8x32xf32> to vector<8x32xbf16>
    %cst_47 = arith.constant dense<0.000000e+00> : vector<8x32xf32>
    %123 = tpu.matmul %116, %9, %cst_47 {dimension_numbers = #tpu.dot_dimension_numbers<[1], [0], [0], [1], [0, 0, 1, 1], [], []>} : vector<8x32xbf16>, vector<32x32xbf16>, vector<8x32xf32> -> vector<8x32xf32>
    %cst_48 = arith.constant dense<0.000000e+00> : vector<8x32xf32>
    %124 = tpu.matmul %122, %7, %cst_48 {dimension_numbers = #tpu.dot_dimension_numbers<[1], [0], [0], [1], [0, 0, 1, 1], [], []>} : vector<8x32xbf16>, vector<32x32xbf16>, vector<8x32xf32> -> vector<8x32xf32>
    %125 = arith.addf %123, %124 : vector<8x32xf32>
    %126 = vector.broadcast %13 : vector<1x32xf32> to vector<8x32xf32>
    %127 = arith.addf %125, %126 : vector<8x32xf32>
    %128 = math.tanh %127 : vector<8x32xf32>
    %129 = arith.truncf %128 : vector<8x32xf32> to vector<8x32xbf16>
    %cst_49 = arith.constant dense<0.000000e+00> : vector<8x1xf32>
    %130 = tpu.matmul %129, %14, %cst_49 {dimension_numbers = #tpu.dot_dimension_numbers<[1], [0], [0], [1], [0, 0, 1, 1], [], []>} : vector<8x32xbf16>, vector<32x1xbf16>, vector<8x1xf32> -> vector<8x1xf32>
    %131 = vector.broadcast %15 : vector<1x1xf32> to vector<8x1xf32>
    %132 = arith.addf %130, %131 : vector<8x1xf32>
    %133 = vector.broadcast %132 : vector<8x1xf32> to vector<8x32xf32>
    %134 = vector.broadcast %4 : vector<1x32xf32> to vector<8x32xf32>
    %135 = arith.mulf %133, %134 : vector<8x32xf32>
    %136 = vector.broadcast %11 : vector<1x32xf32> to vector<8x32xf32>
    %137 = arith.addf %135, %136 : vector<8x32xf32>
    %cst_50 = arith.constant dense<0.000000e+00> : vector<8x32xf32>
    %138 = tpu.matmul %122, %5, %cst_50 {dimension_numbers = #tpu.dot_dimension_numbers<[1], [0], [0], [1], [0, 0, 1, 1], [], []>} : vector<8x32xbf16>, vector<32x32xbf16>, vector<8x32xf32> -> vector<8x32xf32>
    %139 = arith.addf %137, %138 : vector<8x32xf32>
    %140 = math.tanh %139 : vector<8x32xf32>
    %141 = arith.truncf %140 : vector<8x32xf32> to vector<8x32xbf16>
    %cst_51 = arith.constant dense<0.000000e+00> : vector<8x32xf32>
    %142 = tpu.matmul %129, %9, %cst_51 {dimension_numbers = #tpu.dot_dimension_numbers<[1], [0], [0], [1], [0, 0, 1, 1], [], []>} : vector<8x32xbf16>, vector<32x32xbf16>, vector<8x32xf32> -> vector<8x32xf32>
    %cst_52 = arith.constant dense<0.000000e+00> : vector<8x32xf32>
    %143 = tpu.matmul %141, %7, %cst_52 {dimension_numbers = #tpu.dot_dimension_numbers<[1], [0], [0], [1], [0, 0, 1, 1], [], []>} : vector<8x32xbf16>, vector<32x32xbf16>, vector<8x32xf32> -> vector<8x32xf32>
    %144 = arith.addf %142, %143 : vector<8x32xf32>
    %145 = vector.broadcast %13 : vector<1x32xf32> to vector<8x32xf32>
    %146 = arith.addf %144, %145 : vector<8x32xf32>
    %147 = math.tanh %146 : vector<8x32xf32>
    %148 = arith.truncf %147 : vector<8x32xf32> to vector<8x32xbf16>
    %cst_53 = arith.constant dense<0.000000e+00> : vector<8x1xf32>
    %149 = tpu.matmul %148, %14, %cst_53 {dimension_numbers = #tpu.dot_dimension_numbers<[1], [0], [0], [1], [0, 0, 1, 1], [], []>} : vector<8x32xbf16>, vector<32x1xbf16>, vector<8x1xf32> -> vector<8x1xf32>
    %150 = vector.broadcast %15 : vector<1x1xf32> to vector<8x1xf32>
    %151 = arith.addf %149, %150 : vector<8x1xf32>
    %152 = vector.broadcast %151 : vector<8x1xf32> to vector<8x32xf32>
    %153 = vector.broadcast %4 : vector<1x32xf32> to vector<8x32xf32>
    %154 = arith.mulf %152, %153 : vector<8x32xf32>
    %155 = vector.broadcast %11 : vector<1x32xf32> to vector<8x32xf32>
    %156 = arith.addf %154, %155 : vector<8x32xf32>
    %cst_54 = arith.constant dense<0.000000e+00> : vector<8x32xf32>
    %157 = tpu.matmul %141, %5, %cst_54 {dimension_numbers = #tpu.dot_dimension_numbers<[1], [0], [0], [1], [0, 0, 1, 1], [], []>} : vector<8x32xbf16>, vector<32x32xbf16>, vector<8x32xf32> -> vector<8x32xf32>
    %158 = arith.addf %156, %157 : vector<8x32xf32>
    %159 = math.tanh %158 : vector<8x32xf32>
    %160 = arith.truncf %159 : vector<8x32xf32> to vector<8x32xbf16>
    %cst_55 = arith.constant dense<0.000000e+00> : vector<8x32xf32>
    %161 = tpu.matmul %148, %9, %cst_55 {dimension_numbers = #tpu.dot_dimension_numbers<[1], [0], [0], [1], [0, 0, 1, 1], [], []>} : vector<8x32xbf16>, vector<32x32xbf16>, vector<8x32xf32> -> vector<8x32xf32>
    %cst_56 = arith.constant dense<0.000000e+00> : vector<8x32xf32>
    %162 = tpu.matmul %160, %7, %cst_56 {dimension_numbers = #tpu.dot_dimension_numbers<[1], [0], [0], [1], [0, 0, 1, 1], [], []>} : vector<8x32xbf16>, vector<32x32xbf16>, vector<8x32xf32> -> vector<8x32xf32>
    %163 = arith.addf %161, %162 : vector<8x32xf32>
    %164 = vector.broadcast %13 : vector<1x32xf32> to vector<8x32xf32>
    %165 = arith.addf %163, %164 : vector<8x32xf32>
    %166 = math.tanh %165 : vector<8x32xf32>
    %167 = arith.truncf %166 : vector<8x32xf32> to vector<8x32xbf16>
    %cst_57 = arith.constant dense<0.000000e+00> : vector<8x1xf32>
    %168 = tpu.matmul %167, %14, %cst_57 {dimension_numbers = #tpu.dot_dimension_numbers<[1], [0], [0], [1], [0, 0, 1, 1], [], []>} : vector<8x32xbf16>, vector<32x1xbf16>, vector<8x1xf32> -> vector<8x1xf32>
    %169 = vector.broadcast %15 : vector<1x1xf32> to vector<8x1xf32>
    %170 = arith.addf %168, %169 : vector<8x1xf32>
    %171 = tpu.concatenate %38, %51, %64, %77, %90, %103, %116 in 1 : vector<8x32xbf16>, vector<8x32xbf16>, vector<8x32xbf16>, vector<8x32xbf16>, vector<8x32xbf16>, vector<8x32xbf16>, vector<8x32xbf16> -> vector<8x224xbf16>
    %c0_58 = arith.constant 0 : index
    %c0_59 = arith.constant 0 : index
    %172 = vector.load %arg7[%c0_58, %c0_59] : memref<224x7xbf16, #tpu.memory_space<vmem>>, vector<224x7xbf16>
    %cst_60 = arith.constant dense<0.000000e+00> : vector<8x7xf32>
    %173 = tpu.matmul %171, %172, %cst_60 {dimension_numbers = #tpu.dot_dimension_numbers<[1], [0], [0], [1], [0, 0, 1, 1], [], []>} : vector<8x224xbf16>, vector<224x7xbf16>, vector<8x7xf32> -> vector<8x7xf32>
    %174 = vector.broadcast %15 : vector<1x1xf32> to vector<8x7xf32>
    %175 = arith.addf %173, %174 : vector<8x7xf32>
    %176 = tpu.concatenate %175, %132, %151, %170 in 1 : vector<8x7xf32>, vector<8x1xf32>, vector<8x1xf32>, vector<8x1xf32> -> vector<8x10xf32>
    %c0_61 = arith.constant 0 : index
    %c0_62 = arith.constant 0 : index
    %177 = vector.load %arg11[%c0_61, %c0_62] : memref<8x10xf32, #tpu.memory_space<vmem>>, vector<8x10xf32>
    tpu.vector_store %arg11[%c0_61, %c0_62], %176 {strides = array<i32>} : memref<8x10xf32, #tpu.memory_space<vmem>>, vector<8x10xf32>,
    return
  }
  func.func @transform_0(%arg0: i32) -> (i32, i32) {
    %c0_i32 = arith.constant 0 : i32
    %c0_i32_0 = arith.constant 0 : i32
    return %arg0, %c0_i32 : i32, i32
  }
  func.func @transform_1(%arg0: i32) -> (i32, i32, i32) {
    %c0_i32 = arith.constant 0 : i32
    %c0_i32_0 = arith.constant 0 : i32
    %c0_i32_1 = arith.constant 0 : i32
    return %c0_i32, %arg0, %c0_i32_0 : i32, i32, i32
  }
  func.func @transform_2(%arg0: i32) -> (i32, i32) {
    %c0_i32 = arith.constant 0 : i32
    %c0_i32_0 = arith.constant 0 : i32
    %c0_i32_1 = arith.constant 0 : i32
    return %c0_i32, %c0_i32_0 : i32, i32
  }
  func.func @transform_3(%arg0: i32) -> (i32, i32) {
    %c0_i32 = arith.constant 0 : i32
    %c0_i32_0 = arith.constant 0 : i32
    %c0_i32_1 = arith.constant 0 : i32
    return %c0_i32, %c0_i32_0 : i32, i32
  }
  func.func @transform_4(%arg0: i32) -> (i32, i32, i32) {
    %c0_i32 = arith.constant 0 : i32
    %c0_i32_0 = arith.constant 0 : i32
    %c0_i32_1 = arith.constant 0 : i32
    %c0_i32_2 = arith.constant 0 : i32
    return %c0_i32, %c0_i32_0, %c0_i32_1 : i32, i32, i32
  }
  func.func @transform_5(%arg0: i32) -> (i32, i32, i32) {
    %c0_i32 = arith.constant 0 : i32
    %c0_i32_0 = arith.constant 0 : i32
    %c0_i32_1 = arith.constant 0 : i32
    %c0_i32_2 = arith.constant 0 : i32
    return %c0_i32, %c0_i32_0, %c0_i32_1 : i32, i32, i32
  }
  func.func @transform_6(%arg0: i32) -> (i32, i32) {
    %c0_i32 = arith.constant 0 : i32
    %c0_i32_0 = arith.constant 0 : i32
    %c0_i32_1 = arith.constant 0 : i32
    return %c0_i32, %c0_i32_0 : i32, i32
  }
  func.func @transform_7(%arg0: i32) -> (i32, i32, i32) {
    %c0_i32 = arith.constant 0 : i32
    %c0_i32_0 = arith.constant 0 : i32
    %c0_i32_1 = arith.constant 0 : i32
    %c0_i32_2 = arith.constant 0 : i32
    return %c0_i32, %c0_i32_0, %c0_i32_1 : i32, i32, i32
  }
  func.func @transform_8(%arg0: i32) -> (i32, i32) {
    %c0_i32 = arith.constant 0 : i32
    %c0_i32_0 = arith.constant 0 : i32
    %c0_i32_1 = arith.constant 0 : i32
    return %c0_i32, %c0_i32_0 : i32, i32
  }
  func.func @transform_9(%arg0: i32) -> (i32, i32) {
    %c0_i32 = arith.constant 0 : i32
    %c0_i32_0 = arith.constant 0 : i32
    %c0_i32_1 = arith.constant 0 : i32
    return %c0_i32, %c0_i32_0 : i32, i32
  }
  func.func @transform_10(%arg0: i32) -> (i32, i32) {
    %c0_i32 = arith.constant 0 : i32
    %c0_i32_0 = arith.constant 0 : i32
    return %arg0, %c0_i32 : i32, i32
  }
}

</mosaic_0001>

<bundles_post_ra>
// kernel: tpu_custom_call.1
= control target key start
LH: loop header
LB: loop body
LE: loop exit
PB: predicated region body
PF: predicated region fallthrough
CT: control target
= control target key end

     0   :  { %s2935_s0 = inlined_call_operand.vmem [shape: f32[8,8], index: 0, kind: input, shape index: {}]   ;;  %s2936_s1 = inlined_call_operand.vmem [shape: bf16[2,8,32], index: 1, kind: input, shape index: {}]   ;;  %s2937_s2 = inlined_call_operand.vmem [shape: f32[1,32], index: 2, kind: input, shape index: {}]   ;;  %s2938_s3 = inlined_call_operand.vmem [shape: bf16[32,32], index: 3, kind: input, shape index: {}]   ;;  %s2939_s4 = inlined_call_operand.vmem [shape: bf16[1,32,32], index: 4, kind: input, shape index: {}]   ;;  %s2940_s5 = inlined_call_operand.vmem [shape: bf16[1,32,32], index: 5, kind: input, shape index: {}]   ;;  %s2941_s6 = inlined_call_operand.vmem [shape: bf16[224,7], index: 6, kind: input, shape index: {}]   ;;  %s2942_s7 = inlined_call_operand.vmem [shape: f32[2,1,32], index: 7, kind: input, shape index: {}]   ;;  %s2943_s8 = inlined_call_operand.vmem [shape: bf16[32,1], index: 8, kind: input, shape index: {}]   ;;  %s2944_s9 = inlined_call_operand.<no memory space> [shape: f32[1,1], index: 9, kind: input, shape index: {}]   ;;  %s2945_s10 = inlined_call_operand.hbm [shape: f32[8,10], index: 10, kind: output, shape index: {}]  }
   0x1   :  { %v15_v0 = vstv %s2944_s9 }
   0x2   :  { %16 = vst [vmem:[#allocation2] sm:$0x1] %v15_v0 }
   0x3   :  { %v63_v1 = vld [vmem:[%s2935_s0] sm:$0xff]  ;;  %v2440_v2 = vmov 0.0   ;;  %v2515_v3 = vld [vmem:[%s2938_s3 + $0x8] sm:$0xff]   ;;  %vm2441_vm0 = vmmov 0   ;;  %vm192_vm1 = vcmask 261120  }
   0x4   :  { %64 = vxpose.xlu0.b32.start.end [1/1] (short) (narrow) %v63_v1, 8  ;;  %2080 = vmatprep.subr.bf16.mxu0 %v2440_v2  ;;  %v2520_v4 = vld [vmem:[%s2938_s3] sm:$0xff]  }
   0x5   :  { %2136 = vmatprep.subr.bf16.mxu1 %v2440_v2  ;;  %2081 = vmatpush3.bf16.msra.mxu0 %v2515_v3  ;;  %v39_v5 = vld [vmem:[%s2936_s1] sm:$0xf] }
   0x6   :  { %2084 = vmatprep.mubr.msk.bf16.mxu0 %vm2441_vm0, %v2440_v2  ;;  %2082 = vmatprep.subr.bf16.mxu0 %v2440_v2 }
   0x7   :  { %2140 = vmatprep.mubr.msk.bf16.mxu1 %vm2441_vm0, %v2440_v2 }
   0x9   :  { %2083 = vmatpush3.bf16.msra.mxu0 %v2520_v4 }
   0xa   :  { %2088 = vmatprep.subr.bf16.mxu0 %v2440_v2 }
   0xc   :  { %2085 = vmatmul.mubr.msk.bf16.vlgmr.msra.gmra.mxu0 %vm192_vm1, %v39_v5 }
   0xd   :  { %2092 = vmatprep.mubr.msk.bf16.mxu0 %vm2441_vm0, %v2440_v2 }
   0xe   :  { %17 = vsyncpa [#allocation4], 0  ;;  %v96_v6 = vlaneseq  ;;  %v2540_v14 = vld [vmem:[%s2939_s4 + $0x8] sm:$0xff]   ;;  %v2548_v17 = vld [vmem:[%s2939_s4] sm:$0xff]   ;;  %s2444_s12 = smov 32   ;;  %s2445_s16 = smov 96  }
   0xf   :  { %2089 = vmatpush3.bf16.msra.mxu0 %v2540_v14  ;;  %2137 = vmatpush3.bf16.msra.mxu1 %v2540_v14  ;;  %v2558_v31 = vld [vmem:[%s2937_s2] ss:$0 sm:$0xff]  ;;  %v2570_v38 = vld [vmem:[%s2940_s5 + $0x8] sm:$0xff]   ;;  %v1919_v41 = vld [vmem:[%s2936_s1 + $0x4] sm:$0xf]  ;;  %s2446_s17 = smov 7  }
  0x10   :  { %v97_v7 = vshrl.u32 %v96_v6, 7  ;;  %2090 = vmatprep.subr.bf16.mxu0 %v2440_v2  ;;  %2138 = vmatprep.subr.bf16.mxu1 %v2440_v2  ;;  %v2563_v33 = vld [vmem:[%s2942_s7] ss:$0 sm:$0xff]  ;;  %v2606_v56 = vld [vmem:[%s2942_s7 + $0x1] ss:$0 sm:$0xff]  ;;  %s2442_s7 = smov 64  }
  0x11   :  { %v2577_v40 = vld [vmem:[%s2940_s5] sm:$0xff]   ;;  %s2447_s18 = smov 8   ;;  %vm1718_vm2 = vcmask 523264   ;;  %vm1721_vm3 = vcmask 785408   ;;  %vm1897_vm4 = vcmask 56320   ;;  %vm1899_vm5 = vcmask 64512  }
  0x12   :  { %v105_v8 = vsub.s32 1, %v97_v7  ;;  %v98_v9 = vsub.s32 0, %v97_v7  ;;  %v112_v13 = vsub.s32 2, %v97_v7  ;;  %v119_v16 = vsub.s32 3, %v97_v7 }
  0x13   :  { %v126_v19 = vsub.s32 4, %v97_v7  ;;  %2091 = vmatpush3.bf16.msra.mxu0 %v2548_v17  ;;  %2139 = vmatpush3.bf16.msra.mxu1 %v2548_v17  ;;  %v133_v21 = vsub.s32 5, %v97_v7  ;;  %v140_v23 = vsub.s32 6, %v97_v7  ;;  %v147_v25 = vsub.s32 7, %v97_v7 }
  0x14   :  { %2096 = vmatprep.subr.bf16.mxu0 %v2440_v2  ;;  %2152 = vmatprep.subr.bf16.mxu1 %v2440_v2  ;;  %vm1901_vm6 = vcmask 72704   ;;  %vm1903_vm7 = vcmask 80896  }
  0x80   :  { %v80_v10 = vpop.trf.xlu0 }
  0x81   :  { %v106_v11 = vrot.slane %v80_v10, %v105_v8  ;;  %v99_v12 = vrot.slane %v80_v10, %v98_v9  ;;  %v113_v15 = vrot.slane %v80_v10, %v112_v13  ;;  %v120_v18 = vrot.slane %v80_v10, %v119_v16 }
  0x82   :  { %v127_v20 = vrot.slane %v80_v10, %v126_v19  ;;  %v134_v22 = vrot.slane %v80_v10, %v133_v21  ;;  %v141_v24 = vrot.slane %v80_v10, %v140_v23  ;;  %v148_v26 = vrot.slane %v80_v10, %v147_v25 }
  0x83   :  { %108 = vbcast.lane.b32.xlu1 %v106_v11, 256  ;;  %101 = vbcast.lane.b32.xlu0 %v99_v12, 256 }
  0x87   :  { %115 = vbcast.lane.b32.xlu1 %v113_v15, 256 }
  0x8b   :  { %122 = vbcast.lane.b32.xlu1 %v120_v18, 256 }
  0x8f   :  { %129 = vbcast.lane.b32.xlu1 %v127_v20, 256 }
  0x93   :  { %136 = vbcast.lane.b32.xlu1 %v134_v22, 256 }
  0x97   :  { %143 = vbcast.lane.b32.xlu1 %v141_v24, 256 }
  0x9b   :  { %150 = vbcast.lane.b32.xlu1 %v148_v26, 256 }
  0xcc   :  { %v230_v27 = vpop.f32.mrf.mxu0 }
  0xce   :  { %v2086_v28 = vpop.f32.mrf.mxu0 }
  0xd0   :  { %v233_v29 = vpop.f32.mrf.mxu0 }
  0xd2   :  { %v2087_v30 = vpop.f32.mrf.mxu0 }
  0xf5   :  { %v102_v32 = vpop.permute.xlu0 %101  ;;  %v109_v46 = vpop.permute.xlu1 %108 }
  0xf6   :  { %v158_v34 = vmul.f32 %v2558_v31, %v102_v32  ;;  %v159_v49 = vmul.f32 %v2558_v31, %v109_v46 }
  0xf8   :  { %v172_v35 = vadd.f32 %v2563_v33, %v158_v34  ;;  %v173_v52 = vadd.f32 %v2563_v33, %v159_v49 }
  0xf9   :  { %v116_v8 = vpop.permute.xlu1 %115 }
  0xfa   :  { %v236_v36 = vadd.f32 %v230_v27, %v172_v35  ;;  %v160_v12 = vmul.f32 %v2558_v31, %v116_v8 }
  0xfc   :  { %2378 = vtanh.f32 %v236_v36  ;;  %v174_v18 = vadd.f32 %v2563_v33, %v160_v12 }
  0xfd   :  { %v123_v32 = vpop.permute.xlu1 %122 }
 0x109   :  { %v2379_v37 = vpop.eup %2378 }
 0x10a   :  { %v238_v39 = vpack.c.bf16 %v2379_v37, %v2379_v37 }
 0x10c   :  { %2093 = vmatmul.mubr.msk.bf16.vlgmr.msra.gmra.mxu0 %vm192_vm1, %v238_v39 }
 0x10d   :  { %2097 = vmatpush3.bf16.msra.mxu0 %v2570_v38  ;;  %2100 = vmatprep.mubr.msk.bf16.mxu0 %vm2441_vm0, %v2440_v2 }
 0x10e   :  { %2098 = vmatprep.subr.bf16.mxu0 %v2440_v2 }
 0x111   :  { %2099 = vmatpush3.bf16.msra.mxu0 %v2577_v40 }
 0x112   :  { %2104 = vmatprep.subr.bf16.mxu0 %v2440_v2 }
 0x114   :  { %2101 = vmatmul.mubr.msk.bf16.vlgmr.msra.gmra.mxu0 %vm192_vm1, %v1919_v41 }
 0x115   :  { %2105 = vmatpush3.bf16.msra.mxu0 %v2515_v3  ;;  %2108 = vmatprep.mubr.msk.bf16.mxu0 %vm2441_vm0, %v2440_v2 }
 0x116   :  { %2106 = vmatprep.subr.bf16.mxu0 %v2440_v2 }
 0x119   :  { %2107 = vmatpush3.bf16.msra.mxu0 %v2520_v4 }
 0x11a   :  { %2112 = vmatprep.subr.bf16.mxu0 %v2440_v2 }
 0x11c   :  { %2109 = vmatmul.mubr.msk.bf16.vlgmr.msra.gmra.mxu0 %vm192_vm1, %v238_v39  ;;  %v161_v39 = vmul.f32 %v2558_v31, %v123_v32 }
 0x11d   :  { %2113 = vmatpush3.bf16.msra.mxu0 %v2540_v14  ;;  %2116 = vmatprep.mubr.msk.bf16.mxu0 %vm2441_vm0, %v2440_v2 }
 0x11e   :  { %2114 = vmatprep.subr.bf16.mxu0 %v2440_v2 }
 0x121   :  { %2115 = vmatpush3.bf16.msra.mxu0 %v2548_v17 }
 0x122   :  { %2120 = vmatprep.subr.bf16.mxu0 %v2440_v2 }
 0x1cc   :  { %v288_v42 = vpop.f32.mrf.mxu0 }
 0x1ce   :  { %v2094_v43 = vpop.f32.mrf.mxu0 }
 0x1d0   :  { %v291_v44 = vpop.f32.mrf.mxu0 }
 0x1d1   :  { %v175_v44 = vadd.f32 %v2563_v33, %v161_v39 }
 0x1d2   :  { %v2095_v45 = vpop.f32.mrf.mxu0 }
 0x1d4   :  { %v343_v47 = vpop.f32.mrf.mxu0 }
 0x1d5   :  { %v344_v54 = vadd.f32 %v343_v47, %v288_v42 }
 0x1d6   :  { %v2102_v48 = vpop.f32.mrf.mxu0 }
 0x1d7   :  { %v355_v59 = vadd.f32 %v2606_v56, %v344_v54 }
 0x1d8   :  { %v346_v50 = vpop.f32.mrf.mxu0 }
 0x1da   :  { %v2103_v51 = vpop.f32.mrf.mxu0 }
 0x1dc   :  { %v392_v53 = vpop.f32.mrf.mxu0 }
 0x1dd   :  { %v398_v55 = vadd.f32 %v392_v53, %v173_v52 }
 0x1de   :  { %v2110_v57 = vpop.f32.mrf.mxu0 }
 0x1df   :  { %2380 = vtanh.f32 %v398_v55 }
 0x1e0   :  { %v395_v58 = vpop.f32.mrf.mxu0  ;;  %2382 = vtanh.f32 %v355_v59 }
 0x1e1   :  { %v130_v58 = vpop.permute.xlu1 %129 }
 0x1e2   :  { %v2111_v60 = vpop.f32.mrf.mxu0 }
 0x1ec   :  { %v2381_v61 = vpop.eup %2380 }
 0x1ed   :  { %v400_v62 = vpack.c.bf16 %v2381_v61, %v2381_v61  ;;  %v2383_v63 = vpop.eup %2382 }
 0x1ee   :  { %v2615_v0 = vpack.c.bf16 %v2383_v63, %v2383_v63  ;;  %v162_v63 = vmul.f32 %v2558_v31, %v130_v58 }
 0x1ef   :  { %2117 = vmatmul.mubr.msk.bf16.vlgmr.msra.gmra.mxu0 %vm192_vm1, %v400_v62 }
 0x1f0   :  { %2121 = vmatpush3.bf16.msra.mxu0 %v2570_v38  ;;  %2124 = vmatprep.mubr.msk.bf16.mxu0 %vm2441_vm0, %v2440_v2 }
 0x1f1   :  { %2122 = vmatprep.subr.bf16.mxu0 %v2440_v2 }
 0x1f4   :  { %2123 = vmatpush3.bf16.msra.mxu0 %v2577_v40 }
 0x1f5   :  { %2128 = vmatprep.subr.bf16.mxu0 %v2440_v2 }
 0x1f7   :  { %2125 = vmatmul.mubr.msk.bf16.vlgmr.msra.gmra.mxu0 %vm192_vm1, %v2615_v0 }
 0x1f8   :  { %2129 = vmatpush3.bf16.msra.mxu0 %v2515_v3  ;;  %2132 = vmatprep.mubr.msk.bf16.mxu0 %vm2441_vm0, %v2440_v2 }
 0x1f9   :  { %2130 = vmatprep.subr.bf16.mxu0 %v2440_v2 }
 0x1fc   :  { %2131 = vmatpush3.bf16.msra.mxu0 %v2520_v4 }
 0x1fd   :  { %2144 = vmatprep.subr.bf16.mxu0 %v2440_v2 }
 0x1ff   :  { %2133 = vmatmul.mubr.msk.bf16.vlgmr.msra.gmra.mxu0 %vm192_vm1, %v400_v62 }
 0x200   :  { %2145 = vmatpush3.bf16.msra.mxu0 %v2570_v38  ;;  %2148 = vmatprep.mubr.msk.bf16.mxu0 %vm2441_vm0, %v2440_v2 }
 0x201   :  { %2146 = vmatprep.subr.bf16.mxu0 %v2440_v2 }
 0x204   :  { %2147 = vmatpush3.bf16.msra.mxu0 %v2577_v40 }
 0x205   :  { %2160 = vmatprep.subr.bf16.mxu0 %v2440_v2 }
 0x2af   :  { %v438_v1 = vpop.f32.mrf.mxu0 }
 0x2b1   :  { %v2118_v5 = vpop.f32.mrf.mxu0 }
 0x2b3   :  { %v441_v6 = vpop.f32.mrf.mxu0 }
 0x2b5   :  { %v2119_v7 = vpop.f32.mrf.mxu0 }
 0x2b6   :  { %v176_v7 = vadd.f32 %v2563_v33, %v162_v63 }
 0x2b7   :  { %v481_v9 = vpop.f32.mrf.mxu0 }
 0x2b8   :  { %v482_v10 = vadd.f32 %v481_v9, %v438_v1 }
 0x2b9   :  { %v2126_v11 = vpop.f32.mrf.mxu0 }
 0x2ba   :  { %v487_v13 = vadd.f32 %v2606_v56, %v482_v10 }
 0x2bb   :  { %v484_v15 = vpop.f32.mrf.mxu0 }
 0x2bc   :  { %2384 = vtanh.f32 %v487_v13 }
 0x2bd   :  { %v2127_v16 = vpop.f32.mrf.mxu0 }
 0x2bf   :  { %v524_v19 = vpop.f32.mrf.mxu0 }
 0x2c0   :  { %v530_v20 = vadd.f32 %v524_v19, %v174_v18 }
 0x2c1   :  { %v2134_v21 = vpop.f32.mrf.mxu0 }
 0x2c2   :  { %2386 = vtanh.f32 %v530_v20 }
 0x2c3   :  { %v527_v22 = vpop.f32.mrf.mxu0 }
 0x2c4   :  { %v137_v22 = vpop.permute.xlu1 %136 }
 0x2c5   :  { %v2135_v23 = vpop.f32.mrf.mxu0 }
 0x2c9   :  { %v2385_v24 = vpop.eup %2384 }
 0x2ca   :  { %v2636_v25 = vpack.c.bf16 %v2385_v24, %v2385_v24 }
 0x2cc   :  { %2149 = vmatmul.mubr.msk.bf16.vlgmr.msra.gmra.mxu0 %vm192_vm1, %v2636_v25 }
 0x2cd   :  { %2161 = vmatpush3.bf16.msra.mxu0 %v2540_v14  ;;  %2164 = vmatprep.mubr.msk.bf16.mxu0 %vm2441_vm0, %v2440_v2 }
 0x2ce   :  { %2162 = vmatprep.subr.bf16.mxu0 %v2440_v2 }
 0x2cf   :  { %v2387_v26 = vpop.eup %2386 }
 0x2d0   :  { %v532_v27 = vpack.c.bf16 %v2387_v26, %v2387_v26 }
 0x2d1   :  { %2163 = vmatpush3.bf16.msra.mxu0 %v2548_v17 }
 0x2d2   :  { %2141 = vmatmul.mubr.msk.bf16.vlgmr.msra.gmra.mxu1 %vm192_vm1, %v532_v27  ;;  %2176 = vmatprep.subr.bf16.mxu0 %v2440_v2 }
 0x2d3   :  { %2153 = vmatpush3.bf16.msra.mxu1 %v2515_v3  ;;  %2156 = vmatprep.mubr.msk.bf16.mxu1 %vm2441_vm0, %v2440_v2 }
 0x2d4   :  { %2154 = vmatprep.subr.bf16.mxu1 %v2440_v2 }
 0x2d7   :  { %2155 = vmatpush3.bf16.msra.mxu1 %v2520_v4 }
 0x2d8   :  { %2168 = vmatprep.subr.bf16.mxu1 %v2440_v2 }
 0x2da   :  { %2157 = vmatmul.mubr.msk.bf16.vlgmr.msra.gmra.mxu1 %vm192_vm1, %v532_v27 }
 0x2db   :  { %2169 = vmatpush3.bf16.msra.mxu1 %v2570_v38  ;;  %2172 = vmatprep.mubr.msk.bf16.mxu1 %vm2441_vm0, %v2440_v2 }
 0x2dc   :  { %2170 = vmatprep.subr.bf16.mxu1 %v2440_v2 }
 0x2df   :  { %2171 = vmatpush3.bf16.msra.mxu1 %v2577_v40 }
 0x2e0   :  { %2184 = vmatprep.subr.bf16.mxu1 %v2440_v2 }
 0x38c   :  { %v613_v28 = vpop.f32.mrf.mxu0 }
 0x38e   :  { %v2150_v29 = vpop.f32.mrf.mxu0 }
 0x390   :  { %v616_v30 = vpop.f32.mrf.mxu0 }
 0x392   :  { %v570_v34 = vpop.f32.mrf.mxu1  ;;  %v2151_v35 = vpop.f32.mrf.mxu0 }
 0x393   :  { %v614_v36 = vadd.f32 %v613_v28, %v570_v34  ;;  %v163_v28 = vmul.f32 %v2558_v31, %v137_v22 }
 0x394   :  { %v2142_v37 = vpop.f32.mrf.mxu1 }
 0x395   :  { %v619_v41 = vadd.f32 %v2606_v56, %v614_v36  ;;  %v177_v34 = vadd.f32 %v2563_v33, %v163_v28 }
 0x396   :  { %v573_v42 = vpop.f32.mrf.mxu1 }
 0x397   :  { %2388 = vtanh.f32 %v619_v41 }
 0x398   :  { %v2143_v43 = vpop.f32.mrf.mxu1 }
 0x39a   :  { %v656_v45 = vpop.f32.mrf.mxu1 }
 0x39b   :  { %v662_v46 = vadd.f32 %v656_v45, %v175_v44 }
 0x39c   :  { %v2158_v47 = vpop.f32.mrf.mxu1 }
 0x39d   :  { %2390 = vtanh.f32 %v662_v46 }
 0x39e   :  { %v659_v48 = vpop.f32.mrf.mxu1 }
 0x3a0   :  { %v2159_v49 = vpop.f32.mrf.mxu1 }
 0x3a1   :  { %v144_v49 = vpop.permute.xlu1 %143 }
 0x3a4   :  { %v2389_v50 = vpop.eup %2388 }
 0x3a5   :  { %v2663_v51 = vpack.c.bf16 %v2389_v50, %v2389_v50 }
 0x3a7   :  { %2173 = vmatmul.mubr.msk.bf16.vlgmr.msra.gmra.mxu1 %vm192_vm1, %v2663_v51 }
 0x3a8   :  { %2185 = vmatpush3.bf16.msra.mxu1 %v2540_v14  ;;  %2188 = vmatprep.mubr.msk.bf16.mxu1 %vm2441_vm0, %v2440_v2 }
 0x3a9   :  { %2186 = vmatprep.subr.bf16.mxu1 %v2440_v2 }
 0x3aa   :  { %v2391_v52 = vpop.eup %2390 }
 0x3ab   :  { %v664_v53 = vpack.c.bf16 %v2391_v52, %v2391_v52 }
 0x3ac   :  { %2187 = vmatpush3.bf16.msra.mxu1 %v2548_v17 }
 0x3ad   :  { %2165 = vmatmul.mubr.msk.bf16.vlgmr.msra.gmra.mxu0 %vm192_vm1, %v664_v53  ;;  %2200 = vmatprep.subr.bf16.mxu1 %v2440_v2 }
 0x3ae   :  { %2177 = vmatpush3.bf16.msra.mxu0 %v2515_v3  ;;  %2180 = vmatprep.mubr.msk.bf16.mxu0 %vm2441_vm0, %v2440_v2 }
 0x3af   :  { %2178 = vmatprep.subr.bf16.mxu0 %v2440_v2 }
 0x3b2   :  { %2179 = vmatpush3.bf16.msra.mxu0 %v2520_v4 }
 0x3b3   :  { %2192 = vmatprep.subr.bf16.mxu0 %v2440_v2 }
 0x3b5   :  { %2181 = vmatmul.mubr.msk.bf16.vlgmr.msra.gmra.mxu0 %vm192_vm1, %v664_v53 }
 0x3b6   :  { %2193 = vmatpush3.bf16.msra.mxu0 %v2570_v38  ;;  %2196 = vmatprep.mubr.msk.bf16.mxu0 %vm2441_vm0, %v2440_v2 }
 0x3b7   :  { %2194 = vmatprep.subr.bf16.mxu0 %v2440_v2 }
 0x3ba   :  { %2195 = vmatpush3.bf16.msra.mxu0 %v2577_v40 }
 0x3bb   :  { %2208 = vmatprep.subr.bf16.mxu0 %v2440_v2 }
 0x467   :  { %v745_v54 = vpop.f32.mrf.mxu1 }
 0x469   :  { %v2174_v55 = vpop.f32.mrf.mxu1 }
 0x46a   :  { %v164_v55 = vmul.f32 %v2558_v31, %v144_v49 }
 0x46b   :  { %v748_v57 = vpop.f32.mrf.mxu1 }
 0x46d   :  { %v702_v59 = vpop.f32.mrf.mxu0  ;;  %v2175_v60 = vpop.f32.mrf.mxu1 }
 0x46e   :  { %v746_v61 = vadd.f32 %v745_v54, %v702_v59  ;;  %v178_v60 = vadd.f32 %v2563_v33, %v164_v55 }
 0x46f   :  { %v2166_v62 = vpop.f32.mrf.mxu0 }
 0x470   :  { %v751_v1 = vadd.f32 %v2606_v56, %v746_v61 }
 0x471   :  { %v705_v5 = vpop.f32.mrf.mxu0 }
 0x472   :  { %2392 = vtanh.f32 %v751_v1 }
 0x473   :  { %v2167_v6 = vpop.f32.mrf.mxu0 }
 0x475   :  { %v788_v8 = vpop.f32.mrf.mxu0 }
 0x476   :  { %v794_v9 = vadd.f32 %v788_v8, %v176_v7 }
 0x477   :  { %v2182_v10 = vpop.f32.mrf.mxu0 }
 0x478   :  { %2394 = vtanh.f32 %v794_v9 }
 0x479   :  { %v791_v11 = vpop.f32.mrf.mxu0 }
 0x47b   :  { %v2183_v12 = vpop.f32.mrf.mxu0 }
 0x47f   :  { %v2393_v13 = vpop.eup %2392 }
 0x480   :  { %v2690_v15 = vpack.c.bf16 %v2393_v13, %v2393_v13  ;;  %v151_v13 = vpop.permute.xlu1 %150 }
 0x482   :  { %2197 = vmatmul.mubr.msk.bf16.vlgmr.msra.gmra.mxu0 %vm192_vm1, %v2690_v15 }
 0x483   :  { %2209 = vmatpush3.bf16.msra.mxu0 %v2540_v14  ;;  %2212 = vmatprep.mubr.msk.bf16.mxu0 %vm2441_vm0, %v2440_v2 }
 0x484   :  { %2210 = vmatprep.subr.bf16.mxu0 %v2440_v2 }
 0x485   :  { %v2395_v16 = vpop.eup %2394 }
 0x486   :  { %v796_v18 = vpack.c.bf16 %v2395_v16, %v2395_v16 }
 0x487   :  { %2211 = vmatpush3.bf16.msra.mxu0 %v2548_v17 }
 0x488   :  { %2189 = vmatmul.mubr.msk.bf16.vlgmr.msra.gmra.mxu1 %vm192_vm1, %v796_v18  ;;  %2224 = vmatprep.subr.bf16.mxu0 %v2440_v2 }
 0x489   :  { %2201 = vmatpush3.bf16.msra.mxu1 %v2515_v3  ;;  %2204 = vmatprep.mubr.msk.bf16.mxu1 %vm2441_vm0, %v2440_v2 }
 0x48a   :  { %2202 = vmatprep.subr.bf16.mxu1 %v2440_v2 }
 0x48d   :  { %2203 = vmatpush3.bf16.msra.mxu1 %v2520_v4 }
 0x48e   :  { %2216 = vmatprep.subr.bf16.mxu1 %v2440_v2 }
 0x490   :  { %2205 = vmatmul.mubr.msk.bf16.vlgmr.msra.gmra.mxu1 %vm192_vm1, %v796_v18 }
 0x491   :  { %2217 = vmatpush3.bf16.msra.mxu1 %v2570_v38  ;;  %2220 = vmatprep.mubr.msk.bf16.mxu1 %vm2441_vm0, %v2440_v2 }
 0x492   :  { %2218 = vmatprep.subr.bf16.mxu1 %v2440_v2 }
 0x495   :  { %2219 = vmatpush3.bf16.msra.mxu1 %v2577_v40 }
 0x496   :  { %2232 = vmatprep.subr.bf16.mxu1 %v2440_v2 }
 0x542   :  { %v877_v19 = vpop.f32.mrf.mxu0 }
 0x544   :  { %v2198_v20 = vpop.f32.mrf.mxu0 }
 0x546   :  { %v880_v21 = vpop.f32.mrf.mxu0 }
 0x547   :  { %v165_v21 = vmul.f32 %v2558_v31, %v151_v13 }
 0x548   :  { %v834_v23 = vpop.f32.mrf.mxu1  ;;  %v2199_v24 = vpop.f32.mrf.mxu0 }
 0x549   :  { %v878_v26 = vadd.f32 %v877_v19, %v834_v23 }
 0x54a   :  { %v2190_v27 = vpop.f32.mrf.mxu1 }
 0x54b   :  { %v883_v29 = vadd.f32 %v2606_v56, %v878_v26  ;;  %v179_v26 = vadd.f32 %v2563_v33, %v165_v21 }
 0x54c   :  { %v837_v30 = vpop.f32.mrf.mxu1 }
 0x54d   :  { %2396 = vtanh.f32 %v883_v29 }
 0x54e   :  { %v2191_v32 = vpop.f32.mrf.mxu1 }
 0x550   :  { %v920_v35 = vpop.f32.mrf.mxu1 }
 0x551   :  { %v926_v36 = vadd.f32 %v920_v35, %v177_v34 }
 0x552   :  { %v2206_v37 = vpop.f32.mrf.mxu1 }
 0x553   :  { %2398 = vtanh.f32 %v926_v36 }
 0x554   :  { %v923_v39 = vpop.f32.mrf.mxu1 }
 0x555   :  { %v2792_v39 = vld [vmem:[%s2943_s8 + $0x8] sm:$0xff]  }
 0x556   :  { %v2207_v41 = vpop.f32.mrf.mxu1 }
 0x557   :  { %v2799_v41 = vld [vmem:[%s2943_s8] sm:$0xff]  }
 0x55a   :  { %v2397_v42 = vpop.eup %2396 }
 0x55b   :  { %v2717_v43 = vpack.c.bf16 %v2397_v42, %v2397_v42 }
 0x55d   :  { %2221 = vmatmul.mubr.msk.bf16.vlgmr.msra.gmra.mxu1 %vm192_vm1, %v2717_v43 }
 0x55e   :  { %2233 = vmatpush3.bf16.msra.mxu1 %v2540_v14  ;;  %2236 = vmatprep.mubr.msk.bf16.mxu1 %vm2441_vm0, %v2440_v2 }
 0x55f   :  { %2234 = vmatprep.subr.bf16.mxu1 %v2440_v2 }
 0x560   :  { %v2399_v44 = vpop.eup %2398 }
 0x561   :  { %v928_v45 = vpack.c.bf16 %v2399_v44, %v2399_v44 }
 0x562   :  { %2235 = vmatpush3.bf16.msra.mxu1 %v2548_v17 }
 0x563   :  { %2213 = vmatmul.mubr.msk.bf16.vlgmr.msra.gmra.mxu0 %vm192_vm1, %v928_v45  ;;  %2248 = vmatprep.subr.bf16.mxu1 %v2440_v2 }
 0x564   :  { %2225 = vmatpush3.bf16.msra.mxu0 %v2515_v3  ;;  %2228 = vmatprep.mubr.msk.bf16.mxu0 %vm2441_vm0, %v2440_v2 }
 0x565   :  { %2226 = vmatprep.subr.bf16.mxu0 %v2440_v2 }
 0x568   :  { %2227 = vmatpush3.bf16.msra.mxu0 %v2520_v4 }
 0x569   :  { %2240 = vmatprep.subr.bf16.mxu0 %v2440_v2 }
 0x56b   :  { %2229 = vmatmul.mubr.msk.bf16.vlgmr.msra.gmra.mxu0 %vm192_vm1, %v928_v45 }
 0x56c   :  { %2241 = vmatpush3.bf16.msra.mxu0 %v2570_v38  ;;  %2244 = vmatprep.mubr.msk.bf16.mxu0 %vm2441_vm0, %v2440_v2 }
 0x56d   :  { %2242 = vmatprep.subr.bf16.mxu0 %v2440_v2 }
 0x570   :  { %2243 = vmatpush3.bf16.msra.mxu0 %v2577_v40 }
 0x571   :  { %2256 = vmatprep.subr.bf16.mxu0 %v2440_v2 }
 0x61d   :  { %v1009_v46 = vpop.f32.mrf.mxu1 }
 0x61f   :  { %v2222_v47 = vpop.f32.mrf.mxu1 }
 0x621   :  { %v1012_v48 = vpop.f32.mrf.mxu1 }
 0x623   :  { %v966_v50 = vpop.f32.mrf.mxu0  ;;  %v2223_v52 = vpop.f32.mrf.mxu1 }
 0x624   :  { %v1010_v53 = vadd.f32 %v1009_v46, %v966_v50 }
 0x625   :  { %v2214_v54 = vpop.f32.mrf.mxu0 }
 0x626   :  { %v1015_v57 = vadd.f32 %v2606_v56, %v1010_v53 }
 0x627   :  { %v969_v58 = vpop.f32.mrf.mxu0 }
 0x628   :  { %2400 = vtanh.f32 %v1015_v57 }
 0x629   :  { %v2215_v59 = vpop.f32.mrf.mxu0 }
 0x62b   :  { %v1052_v61 = vpop.f32.mrf.mxu0 }
 0x62c   :  { %v1058_v62 = vadd.f32 %v1052_v61, %v178_v60  ;;  %v2818_v61 = vld [vmem:[#allocation2] ss:$0 sm:$0xff] }
 0x62d   :  { %v2230_v63 = vpop.f32.mrf.mxu0 }
 0x62e   :  { %2402 = vtanh.f32 %v1058_v62 }
 0x62f   :  { %v1055_v1 = vpop.f32.mrf.mxu0 }
 0x631   :  { %v2231_v5 = vpop.f32.mrf.mxu0 }
 0x635   :  { %v2401_v6 = vpop.eup %2400 }
 0x636   :  { %v2744_v7 = vpack.c.bf16 %v2401_v6, %v2401_v6 }
 0x638   :  { %2245 = vmatmul.mubr.msk.bf16.vlgmr.msra.gmra.mxu0 %vm192_vm1, %v2744_v7 }
 0x639   :  { %2257 = vmatpush3.bf16.msra.mxu0 %v2540_v14  ;;  %2260 = vmatprep.mubr.msk.bf16.mxu0 %vm2441_vm0, %v2440_v2 }
 0x63a   :  { %2258 = vmatprep.subr.bf16.mxu0 %v2440_v2 }
 0x63b   :  { %v2403_v8 = vpop.eup %2402 }
 0x63c   :  { %v1060_v9 = vpack.c.bf16 %v2403_v8, %v2403_v8 }
 0x63d   :  { %2259 = vmatpush3.bf16.msra.mxu0 %v2548_v17 }
 0x63e   :  { %2237 = vmatmul.mubr.msk.bf16.vlgmr.msra.gmra.mxu1 %vm192_vm1, %v1060_v9  ;;  %2272 = vmatprep.subr.bf16.mxu0 %v2440_v2 }
 0x63f   :  { %2249 = vmatpush3.bf16.msra.mxu1 %v2515_v3  ;;  %2252 = vmatprep.mubr.msk.bf16.mxu1 %vm2441_vm0, %v2440_v2 }
 0x640   :  { %2250 = vmatprep.subr.bf16.mxu1 %v2440_v2 }
 0x643   :  { %2251 = vmatpush3.bf16.msra.mxu1 %v2520_v4 }
 0x644   :  { %2264 = vmatprep.subr.bf16.mxu1 %v2440_v2 }
 0x646   :  { %2253 = vmatmul.mubr.msk.bf16.vlgmr.msra.gmra.mxu1 %vm192_vm1, %v1060_v9 }
 0x647   :  { %2265 = vmatpush3.bf16.msra.mxu1 %v2570_v38  ;;  %2268 = vmatprep.mubr.msk.bf16.mxu1 %vm2441_vm0, %v2440_v2 }
 0x648   :  { %2266 = vmatprep.subr.bf16.mxu1 %v2440_v2 }
 0x64b   :  { %2267 = vmatpush3.bf16.msra.mxu1 %v2577_v40 }
 0x64c   :  { %2280 = vmatprep.subr.bf16.mxu1 %v2440_v2 }
 0x6f8   :  { %v1141_v10 = vpop.f32.mrf.mxu0 }
 0x6fa   :  { %v2246_v11 = vpop.f32.mrf.mxu0 }
 0x6fc   :  { %v1144_v12 = vpop.f32.mrf.mxu0 }
 0x6fe   :  { %v1098_v16 = vpop.f32.mrf.mxu1  ;;  %v2247_v18 = vpop.f32.mrf.mxu0 }
 0x6ff   :  { %v1142_v19 = vadd.f32 %v1141_v10, %v1098_v16 }
 0x700   :  { %v2238_v20 = vpop.f32.mrf.mxu1 }
 0x701   :  { %v1147_v22 = vadd.f32 %v2606_v56, %v1142_v19 }
 0x702   :  { %v1101_v23 = vpop.f32.mrf.mxu1 }
 0x703   :  { %2404 = vtanh.f32 %v1147_v22 }
 0x704   :  { %v2239_v24 = vpop.f32.mrf.mxu1 }
 0x706   :  { %v1184_v27 = vpop.f32.mrf.mxu1 }
 0x707   :  { %v1190_v28 = vadd.f32 %v1184_v27, %v179_v26 }
 0x708   :  { %v2254_v29 = vpop.f32.mrf.mxu1 }
 0x709   :  { %2406 = vtanh.f32 %v1190_v28 }
 0x70a   :  { %v1187_v30 = vpop.f32.mrf.mxu1 }
 0x70c   :  { %v2255_v32 = vpop.f32.mrf.mxu1 }
 0x710   :  { %v2405_v34 = vpop.eup %2404 }
 0x711   :  { %v1149_v35 = vpack.c.bf16 %v2405_v34, %v2405_v34  ;;  %v2365_v34 = vld [vmem:[%s2941_s6 + $0x30] sm:$0xff]  }
 0x713   :  { %1714 = vrot.lane.b32.xlu0 %v1149_v35, %s2442_s7  ;;  %2269 = vmatmul.mubr.msk.bf16.vlgmr.msra.gmra.mxu1 %vm192_vm1, %v1149_v35  ;;  %v2368_v35 = vld [vmem:[%s2941_s6 + $0x18] sm:$0xff]  }
 0x714   :  { %2281 = vmatpush3.bf16.msra.mxu1 %v2515_v3  ;;  %2284 = vmatprep.mubr.msk.bf16.mxu1 %vm2441_vm0, %v2440_v2 }
 0x715   :  { %2282 = vmatprep.subr.bf16.mxu1 %v2440_v2 }
 0x716   :  { %v2407_v36 = vpop.eup %2406 }
 0x717   :  { %v1192_v37 = vpack.c.bf16 %v2407_v36, %v2407_v36  ;;  %v2369_v36 = vld [vmem:[%s2941_s6 + $0x10] sm:$0xff]  }
 0x718   :  { %2283 = vmatpush3.bf16.msra.mxu1 %v2520_v4 }
 0x719   :  { %2261 = vmatmul.mubr.msk.bf16.vlgmr.msra.gmra.mxu0 %vm192_vm1, %v1192_v37  ;;  %2296 = vmatprep.subr.bf16.mxu1 %v2440_v2 }
 0x71a   :  { %2276 = vmatprep.mubr.msk.bf16.mxu0 %vm2441_vm0, %v2440_v2  ;;  %2273 = vmatpush3.bf16.msra.mxu0 %v2792_v39 }
 0x71b   :  { %2285 = vmatmul.mubr.msk.bf16.vlgmr.msra.gmra.mxu1 %vm192_vm1, %v1192_v37  ;;  %2274 = vmatprep.subr.bf16.mxu0 %v2440_v2  ;;  %v2370_v37 = vld [vmem:[%s2941_s6 + $0x8] sm:$0xff]  }
 0x71c   :  { %2297 = vmatpush3.bf16.msra.mxu1 %v2570_v38  ;;  %2300 = vmatprep.mubr.msk.bf16.mxu1 %vm2441_vm0, %v2440_v2 }
 0x71d   :  { %2298 = vmatprep.subr.bf16.mxu1 %v2440_v2 }
 0x71e   :  { %2275 = vmatpush3.bf16.msra.mxu0 %v2799_v41 }
 0x71f   :  { %2288 = vmatprep.subr.bf16.mxu0 %v2440_v2 }
 0x720   :  { %2299 = vmatpush3.bf16.msra.mxu1 %v2577_v40 }
 0x721   :  { %2312 = vmatprep.subr.bf16.mxu1 %v2440_v2 }
 0x7d3   :  { %v1273_v42 = vpop.f32.mrf.mxu1 }
 0x7d5   :  { %v2270_v44 = vpop.f32.mrf.mxu1 }
 0x7d6   :  { %v2372_v44 = vld [vmem:[%s2941_s6 + $0x68] sm:$0xff]  }
 0x7d7   :  { %v1276_v45 = vpop.f32.mrf.mxu1 }
 0x7d8   :  { %v2373_v45 = vld [vmem:[%s2941_s6 + $0x60] sm:$0xff]  }
 0x7d9   :  { %v1230_v46 = vpop.f32.mrf.mxu0  ;;  %v2271_v47 = vpop.f32.mrf.mxu1 }
 0x7da   :  { %v1274_v48 = vadd.f32 %v1273_v42, %v1230_v46  ;;  %v2371_v42 = vld [vmem:[%s2941_s6] sm:$0xff]  }
 0x7db   :  { %v2262_v49 = vpop.f32.mrf.mxu0  ;;  %v1384_v50 = vpop.f32.mrf.mxu1 }
 0x7dc   :  { %v1279_v52 = vadd.f32 %v2606_v56, %v1274_v48  ;;  %v2374_v48 = vld [vmem:[%s2941_s6 + $0x58] sm:$0xff]  }
 0x7dd   :  { %v1233_v53 = vpop.f32.mrf.mxu0  ;;  %v2286_v54 = vpop.f32.mrf.mxu1 }
 0x7de   :  { %2408 = vtanh.f32 %v1279_v52 }
 0x7df   :  { %v2263_v55 = vpop.f32.mrf.mxu0  ;;  %v1387_v57 = vpop.f32.mrf.mxu1 }
 0x7e0   :  { %v2375_v55 = vld [vmem:[%s2941_s6 + $0x50] sm:$0xff]  }
 0x7e1   :  { %v2287_v58 = vpop.f32.mrf.mxu1 }
 0x7eb   :  { %v2409_v59 = vpop.eup %2408 }
 0x7ec   :  { %v1281_v60 = vpack.c.bf16 %v2409_v59, %v2409_v59  ;;  %v2376_v59 = vld [vmem:[%s2941_s6 + $0x48] sm:$0xff]  }
 0x7ee   :  { %2277 = vmatmul.mubr.msk.bf16.vlgmr.msra.gmra.mxu0 %vm192_vm1, %v1281_v60  ;;  %2301 = vmatmul.mubr.msk.bf16.vlgmr.msra.gmra.mxu1 %vm192_vm1, %v1281_v60  ;;  %v2377_v60 = vld [vmem:[%s2941_s6 + $0x40] sm:$0xff]  }
 0x7ef   :  { %2289 = vmatpush3.bf16.msra.mxu0 %v2540_v14  ;;  %2313 = vmatpush3.bf16.msra.mxu1 %v2515_v3  ;;  %v2443_v3 = vmov 0  }
 0x7f0   :  { %2290 = vmatprep.subr.bf16.mxu0 %v2440_v2  ;;  %2314 = vmatprep.subr.bf16.mxu1 %v2440_v2 }
 0x7f1   :  { %2292 = vmatprep.mubr.msk.bf16.mxu0 %vm2441_vm0, %v2440_v2  ;;  %2316 = vmatprep.mubr.msk.bf16.mxu1 %vm2441_vm0, %v2440_v2 }
 0x7f2   :  { %2354 = vset.pattern.permute.xlu1 %v2443_v3  ;;  %2355 = vset.pattern.permute.xlu0 %v2443_v3 }
 0x7f3   :  { %2291 = vmatpush3.bf16.msra.mxu0 %v2548_v17  ;;  %2315 = vmatpush3.bf16.msra.mxu1 %v2520_v4 }
 0x7f4   :  { %2304 = vmatprep.subr.bf16.mxu0 %v2440_v2  ;;  %2328 = vmatprep.subr.bf16.mxu1 %v2440_v2 }
 0x7f5   :  { %1758 = vperm.xlu0 %2355, %v2818_v61  }
 0x8ae   :  { %v1337_v62 = vpop.f32.mrf.mxu0  ;;  %v1470_v63 = vpop.f32.mrf.mxu1 }
 0x8af   :  { %v2824_v1 = vadd.f32 %v2818_v61, %v1337_v62 }
 0x8b0   :  { %v2278_v5 = vpop.f32.mrf.mxu0  ;;  %v2302_v4 = vpop.f32.mrf.mxu1 }
 0x8b1   :  { %1345 = vperm.xlu1 %2354, %v2824_v1  }
 0x8b2   :  { %v1340_v6 = vpop.f32.mrf.mxu0  ;;  %v1473_v8 = vpop.f32.mrf.mxu1 }
 0x8b4   :  { %v2279_v9 = vpop.f32.mrf.mxu0  ;;  %v2303_v10 = vpop.f32.mrf.mxu1 }
 0x92c   :  { %v1346_v11 = vpop.permute.xlu1 %1345 }
 0x92d   :  { %v1348_v12 = vmul.f32 %v2558_v31, %v1346_v11 }
 0x92f   :  { %v1349_v13 = vadd.f32 %v2563_v33, %v1348_v12 }
 0x931   :  { %v1390_v16 = vadd.f32 %v1384_v50, %v1349_v13 }
 0x933   :  { %2410 = vtanh.f32 %v1390_v16 }
 0x940   :  { %v2411_v18 = vpop.eup %2410 }
 0x941   :  { %v1392_v19 = vpack.c.bf16 %v2411_v18, %v2411_v18 }
 0x943   :  { %2293 = vmatmul.mubr.msk.bf16.vlgmr.msra.gmra.mxu0 %vm192_vm1, %v1392_v19  ;;  %2317 = vmatmul.mubr.msk.bf16.vlgmr.msra.gmra.mxu1 %vm192_vm1, %v1392_v19 }
 0x944   :  { %2305 = vmatpush3.bf16.msra.mxu0 %v2792_v39  ;;  %2329 = vmatpush3.bf16.msra.mxu1 %v2570_v38 }
 0x945   :  { %2306 = vmatprep.subr.bf16.mxu0 %v2440_v2  ;;  %2330 = vmatprep.subr.bf16.mxu1 %v2440_v2 }
 0x946   :  { %2308 = vmatprep.mubr.msk.bf16.mxu0 %vm2441_vm0, %v2440_v2  ;;  %2332 = vmatprep.mubr.msk.bf16.mxu1 %vm2441_vm0, %v2440_v2 }
 0x948   :  { %2307 = vmatpush3.bf16.msra.mxu0 %v2799_v41  ;;  %2331 = vmatpush3.bf16.msra.mxu1 %v2577_v40  ;;  %v2364_v40 = vld [vmem:[%s2941_s6 + $0x38] sm:$0xff]  }
 0x949   :  { %1847 = vmatprep.subr.bf16.mxu1 %v2443_v3  ;;  %2320 = vmatprep.subr.bf16.mxu0 %v2440_v2 }
 0xa03   :  { %v1430_v20 = vpop.f32.mrf.mxu0  ;;  %v2843_v38 = vpop.f32.mrf.mxu1 }
 0xa04   :  { %v1471_v21 = vadd.f32 %v1470_v63, %v1430_v20 }
 0xa05   :  { %v2294_v22 = vpop.f32.mrf.mxu0  ;;  %v2318_v23 = vpop.f32.mrf.mxu1 }
 0xa06   :  { %v1476_v24 = vadd.f32 %v2606_v56, %v1471_v21 }
 0xa07   :  { %v1433_v26 = vpop.f32.mrf.mxu0  ;;  %v1566_v27 = vpop.f32.mrf.mxu1 }
 0xa08   :  { %2412 = vtanh.f32 %v1476_v24 }
 0xa09   :  { %v2295_v28 = vpop.f32.mrf.mxu0  ;;  %v2319_v29 = vpop.f32.mrf.mxu1 }
 0xa15   :  { %v2413_v30 = vpop.eup %2412 }
 0xa16   :  { %v1478_v32 = vpack.c.bf16 %v2413_v30, %v2413_v30 }
 0xa18   :  { %2309 = vmatmul.mubr.msk.bf16.vlgmr.msra.gmra.mxu0 %vm192_vm1, %v1478_v32  ;;  %2333 = vmatmul.mubr.msk.bf16.vlgmr.msra.gmra.mxu1 %vm192_vm1, %v1478_v32 }
 0xa19   :  { %2321 = vmatpush3.bf16.msra.mxu0 %v2540_v14  ;;  %2324 = vmatprep.mubr.msk.bf16.mxu0 %vm2441_vm0, %v2440_v2  ;;  %v2366_v14 = vld [vmem:[%s2941_s6 + $0x28] sm:$0xff]  }
 0xa1a   :  { %2322 = vmatprep.subr.bf16.mxu0 %v2440_v2  ;;  %1848 = vmatpush1.bf16.msra.mxu1 %v2364_v40 }
 0xa1b   :  { %1849 = vmatprep.subr.bf16.mxu1 %v2443_v3 }
 0xa1d   :  { %2323 = vmatpush3.bf16.msra.mxu0 %v2548_v17  ;;  %v2367_v17 = vld [vmem:[%s2941_s6 + $0x20] sm:$0xff]   ;;  %s2448_s6 = smov 9  }
 0xa1e   :  { %2336 = vmatprep.subr.bf16.mxu0 %v2440_v2  ;;  %1850 = vmatpush1.bf16.msra.mxu1 %v2365_v34 }
 0xa1f   :  { %1851 = vmatprep.subr.bf16.mxu1 %v2443_v3 }
 0xa22   :  { %1852 = vmatpush1.bf16.msra.mxu1 %v2366_v14 }
 0xa23   :  { %1853 = vmatprep.subr.bf16.mxu1 %v2443_v3 }
 0xa26   :  { %1854 = vmatpush1.bf16.msra.mxu1 %v2367_v17 }
 0xa27   :  { %1855 = vmatprep.subr.bf16.mxu1 %v2443_v3 }
 0xa2a   :  { %1856 = vmatpush1.bf16.msra.mxu1 %v2368_v35 }
 0xa2b   :  { %1857 = vmatprep.subr.bf16.mxu1 %v2443_v3 }
 0xa2e   :  { %1858 = vmatpush1.bf16.msra.mxu1 %v2369_v36 }
 0xa2f   :  { %1859 = vmatprep.subr.bf16.mxu1 %v2443_v3 }
 0xa32   :  { %1860 = vmatpush1.bf16.msra.mxu1 %v2370_v37 }
 0xa33   :  { %1861 = vmatprep.subr.bf16.mxu1 %v2443_v3 }
 0xa36   :  { %1862 = vmatpush1.bf16.msra.mxu1 %v2371_v42 }
 0xa37   :  { %1867 = vmatprep.subr.bf16.mxu1 %v2443_v3 }
 0xa3a   :  { %1868 = vmatpush2.bf16.msra.mxu1 %v2372_v44 }
 0xa3b   :  { %1869 = vmatprep.subr.bf16.mxu1 %v2443_v3 }
 0xa3e   :  { %1870 = vmatpush2.bf16.msra.mxu1 %v2373_v45 }
 0xa3f   :  { %1871 = vmatprep.subr.bf16.mxu1 %v2443_v3 }
 0xa42   :  { %1872 = vmatpush2.bf16.msra.mxu1 %v2374_v48 }
 0xa43   :  { %1873 = vmatprep.subr.bf16.mxu1 %v2443_v3 }
 0xa46   :  { %1874 = vmatpush2.bf16.msra.mxu1 %v2375_v55 }
 0xa47   :  { %1875 = vmatprep.subr.bf16.mxu1 %v2443_v3 }
 0xa4a   :  { %1876 = vmatpush2.bf16.msra.mxu1 %v2376_v59 }
 0xa4b   :  { %1877 = vmatprep.subr.bf16.mxu1 %v2443_v3 }
 0xa4e   :  { %1878 = vmatpush2.bf16.msra.mxu1 %v2377_v60 }
 0xad8   :  { %v1516_v46 = vpop.f32.mrf.mxu0  ;;  %v1649_v47 = vpop.f32.mrf.mxu1 }
 0xad9   :  { %v1517_v49 = vadd.f32 %v2818_v61, %v1516_v46 }
 0xada   :  { %v2310_v50 = vpop.f32.mrf.mxu0  ;;  %v2334_v52 = vpop.f32.mrf.mxu1 }
 0xadb   :  { %1524 = vperm.xlu1 %2354, %v1517_v49  }
 0xadc   :  { %v1519_v53 = vpop.f32.mrf.mxu0  ;;  %v1652_v54 = vpop.f32.mrf.mxu1 }
 0xade   :  { %v2311_v57 = vpop.f32.mrf.mxu0  ;;  %v2335_v58 = vpop.f32.mrf.mxu1 }
 0xadf   :  { %1702 = vrot.lane.b32.xlu1 %v2636_v25, %s2444_s12 }
 0xae3   :  { %1711 = vrot.lane.b32.xlu1 %v2744_v7, %s2444_s12 }
 0xae7   :  { %1705 = vrot.lane.b32.xlu1 %v2663_v51, %s2442_s7  ;;  %v1715_v51 = vpop.permute.xlu0 %1714  ;;  %s2449_s7 = smov [#allocation3]  }
 0xae8   :  { %s1911_s19 = sshll.u32 %s2449_s7, 4  ;;  %s1912_s19 = int_to_ptr.vmem [resolvable:$true] %s1911_s19 }
 0xae9   :  { %s2418_s20 = scalar_lea.vmem %s1912_s19, 128  ;;  %p2423_p1 = scmp.lt.s32.totalorder %s1912_s19, %s1912_s19 }
 0xaea   :  { %p2419_p0 = scmp.ne.s32.totalorder %s1912_s19, %s2418_s20  ;;  %p2424_p2 = scmp.lt.s32.totalorder %s2418_s20, %s2418_s20 }
 0xaeb   :  { %1708 = vrot.lane.b32.xlu1 %v2690_v15, %s2445_s16  ;;  %v1759_v26 = vpop.permute.xlu0 %1758 }
 0xaec   :  { %p2425_p3 = por %p2424_p2, %p2423_p1 }
 0xaee   :  { %p2426_p4 = pnand %p2425_p3, %p2419_p0 }
 0xaef   :  { %1887 = vrot.lane.b32.xlu1 %v2824_v1, %s2446_s17 }
 0xaf3   :  { %1890 = vrot.lane.b32.xlu1 %v1517_v49, %s2447_s18 }
 0xb56   :  { %v1525_v25 = vpop.permute.xlu1 %1524 }
 0xb57   :  { %v1527_v7 = vmul.f32 %v2558_v31, %v1525_v25 }
 0xb59   :  { %v1528_v3 = vadd.f32 %v2563_v33, %v1527_v7 }
 0xb5a   :  { %v1703_v62 = vpop.permute.xlu1 %1702 }
 0xb5b   :  { %v1569_v63 = vadd.f32 %v2843_v38, %v1528_v3  ;;  %v1717_v6 = vsel %vm192_vm1, %v2615_v0, %v1703_v62 }
 0xb5d   :  { %2414 = vtanh.f32 %v1569_v63 }
 0xb5e   :  { %v1712_v5 = vpop.permute.xlu1 %1711 }
 0xb5f   :  { %v1726_v15 = vsel %vm192_vm1, %v2717_v43, %v1712_v5 }
 0xb60   :  { %v1728_v4 = vsel %vm1718_vm2, %v1726_v15, %v1715_v51 }
 0xb61   :  { %1980 = vmatprep.mubr.msk.bf16.mxu1 %vm1721_vm3, %v1728_v4 }
 0xb62   :  { %v1706_v1 = vpop.permute.xlu1 %1705 }
 0xb63   :  { %v1720_v31 = vsel %vm1718_vm2, %v1717_v6, %v1706_v1 }
 0xb66   :  { %v1709_v8 = vpop.permute.xlu1 %1708 }
 0xb67   :  { %v1723_v33 = vsel %vm1721_vm3, %v1720_v31, %v1709_v8 }
 0xb68   :  { %1880 = vmatmul.mubr.bf16.vlgmr.msra.gmra.mxu1 %v1723_v33 }
 0xb6a   :  { %v2415_v9 = vpop.eup %2414  ;;  %v1888_v27 = vpop.permute.xlu1 %1887 }
 0xb6b   :  { %v1571_v10 = vpack.c.bf16 %v2415_v9, %v2415_v9 }
 0xb6d   :  { %2325 = vmatmul.mubr.msk.bf16.vlgmr.msra.gmra.mxu0 %vm192_vm1, %v1571_v10 }
 0xb6e   :  { %2337 = vmatpush3.bf16.msra.mxu0 %v2792_v39  ;;  %2340 = vmatprep.mubr.msk.bf16.mxu0 %vm2441_vm0, %v2440_v2  ;;  %v1891_v29 = vpop.permute.xlu1 %1890 }
 0xb6f   :  { %2338 = vmatprep.subr.bf16.mxu0 %v2440_v2 }
 0xb72   :  { %2339 = vmatpush3.bf16.msra.mxu0 %v2799_v41 }
 0xc28   :  { %v1881_v43 = vpop.f32.mrf.mxu1 }
 0xc29   :  { %v1882_v28 = vadd.f32 %v1881_v43, %v1759_v26 }
 0xc2a   :  { %v1883_v11 = vpop.f32.mrf.mxu1 }
 0xc2c   :  { %v1884_v0 = vpop.f32.mrf.mxu1 }
 0xc2d   :  { %v1609_v12 = vpop.f32.mrf.mxu0 }
 0xc2e   :  { %v1650_v13 = vadd.f32 %v1649_v47, %v1609_v12  ;;  %v1885_v16 = vpop.f32.mrf.mxu1 }
 0xc2f   :  { %v2326_v18 = vpop.f32.mrf.mxu0 }
 0xc30   :  { %v1655_v19 = vadd.f32 %v2606_v56, %v1650_v13  ;;  %v1898_v56 = vsel %vm1897_vm4, %v1882_v28, %v1888_v27 }
 0xc31   :  { %v1612_v20 = vpop.f32.mrf.mxu0  ;;  %v1900_v30 = vsel %vm1899_vm5, %v1898_v56, %v1891_v29 }
 0xc32   :  { %2416 = vtanh.f32 %v1655_v19 }
 0xc33   :  { %v2327_v38 = vpop.f32.mrf.mxu0 }
 0xc3f   :  { %v2417_v39 = vpop.eup %2416 }
 0xc40   :  { %v1657_v21 = vpack.c.bf16 %v2417_v39, %v2417_v39 }
 0xc42   :  { %2341 = vmatmul.mubr.msk.bf16.vlgmr.msra.gmra.mxu0 %vm192_vm1, %v1657_v21 }
 0xd02   :  { %v1695_v22 = vpop.f32.mrf.mxu0 }
 0xd03   :  { %v1696_v2 = vadd.f32 %v2818_v61, %v1695_v22 }
 0xd04   :  { %v2342_v41 = vpop.f32.mrf.mxu0 }
 0xd05   :  { %1894 = vrot.lane.b32.xlu0 %v1696_v2, %s2448_s6 }
 0xd06   :  { %v1698_v23 = vpop.f32.mrf.mxu0 }
 0xd08   :  { %v2343_v24 = vpop.f32.mrf.mxu0 }
 0xd77   :  { %v1895_v32 = vpop.permute.xlu0 %1894 }
 0xd78   :  { %v1902_v61 = vsel %vm1901_vm6, %v1900_v30, %v1895_v32 }
 0xd79   :  { %1904 = vst.msk [vmem:[#allocation3] sm:$0xff] %vm1903_vm7, %v1902_v61 }
 0xd7a   :  { %2429 = shalt.err (!%p2426_p4)
}
 0xd7b   :  { %1914 = dma.vmem_to_hbm [thread:$0]  %s1912_s19, 128, %s2945_s10, [#allocation4]  }
 0xd7c   :  { %2438 = dma.done.wait [#allocation4], 128  }
 0xd7d   :  { %2439 = vsyncadd [#allocation4], 4294967168 }
 0xd7e   :  { %1918 = vsyncpa [#allocation4], 1 }

</bundles_post_ra>
